<compile_context>
chip_gen: v7x
topology: tpu7x:2x2x1
jax: 0.10.0
libtpu: 0.0.40
codegen_flags: <defaults>
</compile_context>

<pallas_src>
import re

import jax
import jax.numpy as jnp
from jax.experimental import pallas as pl
from jax.experimental.pallas import tpu as pltpu

LN_EPS = 1e-5  # PyTorch nn.LayerNorm default


def _round_up(x, m):
    return ((x + m - 1) // m) * m


def _tpu_generation():
    """Best-effort TPU generation from device_kind ('TPU v5 lite' -> 5)."""
    try:
        kind = jax.devices()[0].device_kind.lower()
        m = re.search(r"(\d+)", kind)
        if m:
            return int(m.group(1))
    except Exception:
        pass
    return 6  # default to the modern (bf16-EUP-capable) path


def make_lr_kernel(bf16_tanh: bool):
    def lr_kernel(x_ref, w1_ref, b1_ref, w2_ref, b2_ref, w3_ref, b3_ref, o_ref):
        # ---- LayerNorm over features (affine already folded into W1'/b1') ----
        x = x_ref[...].astype(jnp.float32)                      # (TB, D)
        mean = jnp.mean(x, axis=-1, keepdims=True)
        xc = x - mean
        var = jnp.mean(xc * xc, axis=-1, keepdims=True)
        xn = xc * jax.lax.rsqrt(var + LN_EPS)                   # (TB, D) f32

        # ---- Linear(D, 1024) + Tanh : bf16 MXU operands, f32 accumulate ----
        a1 = jnp.dot(xn.astype(jnp.bfloat16), w1_ref[...],
                     preferred_element_type=jnp.float32) + b1_ref[...]
        if bf16_tanh:
            h1 = jnp.tanh(a1.astype(jnp.bfloat16))              # bf16 EUP -> MXU
        else:
            h1 = jnp.tanh(a1).astype(jnp.bfloat16)              # f32 EUP (v5e)

        # ---- Linear(1024, 512) + Tanh ----
        a2 = jnp.dot(h1, w2_ref[...],
                     preferred_element_type=jnp.float32) + b2_ref[...]
        if bf16_tanh:
            h2 = jnp.tanh(a2.astype(jnp.bfloat16)).astype(jnp.float32)
        else:
            h2 = jnp.tanh(a2)                                   # (TB, 512) f32

        # ---- Linear(512, 1): VPU multiply + lane reduce (no N=1 matmul) ----
        out = jnp.sum(h2 * w3_ref[...], axis=-1, keepdims=True) + b3_ref[0]
        o_ref[...] = out.astype(o_ref.dtype)                    # (TB, 1)

    return lr_kernel


def _select_batch_tile(B, n_cores):
    """Large tiles amortize per-step overhead; on multi-TC chips (v7x) make
    sure the grid has >= n_cores steps so no TensorCore idles."""
    cap = 1024
    if B <= 8 * n_cores:
        return B
    tb = min(cap, _round_up(pl.cdiv(B, n_cores), 8))
    return min(tb, _round_up(B, 8))


def lr_forward(seq, params):
    """seq: (B, 1, D) float32. Returns logits (B, 1) float32."""
    gamma, beta, w1, b1, w2, b2, w3, b3 = params
    x = jnp.squeeze(seq, axis=1)                                # (B, D)
    B, D = x.shape
    H1 = w1.shape[1]
    H2 = w2.shape[1]

    gen = _tpu_generation()
    bf16_tanh = gen >= 6            # v6e/v7x have bf16 VPU/EUP; v5e and older don't
    n_cores = 2 if gen >= 7 else 1  # v7x: 2 TensorCores per chip

    # Fold the LayerNorm affine into Linear1 (host-side, done once).
    w1_folded = w1 * gamma.reshape(D, 1)                        # (D, H1)
    b1_folded = beta @ w1 + b1                                  # (1, H1)

    # bf16 MXU operands for the two large matmuls.
    w1_bf = w1_folded.astype(jnp.bfloat16)
    w2_bf = w2.astype(jnp.bfloat16)

    # Final linear as a row vector for the VPU reduce; b3 as an SMEM scalar.
    w3_row = jnp.transpose(w3)                                  # (1, H2) f32
    b3_s = jnp.reshape(b3, (1,)).astype(jnp.float32)            # (1,)  -> SMEM

    TB = _select_batch_tile(B, n_cores)
    grid = (pl.cdiv(B, TB),)

    resident = lambda r, c: pl.BlockSpec((r, c), lambda i: (0, 0))

    cost = pl.CostEstimate(
        flops=int(2 * B * (D * H1 + H1 * H2 + H2) + 8 * B * D),
        transcendentals=int(B * (H1 + H2 + 1)),
        bytes_accessed=int(w1_bf.size * 2 + w2_bf.size * 2
                           + (b1_folded.size + b2.size + w3_row.size + 1) * 4
                           + x.size * 4 + B * 4),
    )

    return pl.pallas_call(
        make_lr_kernel(bf16_tanh),
        out_shape=jax.ShapeDtypeStruct((B, 1), jnp.float32),
        grid=grid,
        in_specs=[
            pl.BlockSpec((TB, D), lambda i: (i, 0)),             # x tile (pipelined)
            resident(D, H1),                                     # W1' bf16, VMEM-resident
            resident(1, H1),                                     # b1'
            resident(H1, H2),                                    # W2  bf16, VMEM-resident
            resident(1, H2),                                     # b2
            resident(1, H2),                                     # w3 row
            pl.BlockSpec(memory_space=pltpu.MemorySpace.SMEM),   # b3 scalar
        ],
        out_specs=pl.BlockSpec((TB, 1), lambda i: (i, 0)),
        compiler_params=pltpu.CompilerParams(
            dimension_semantics=("parallel",),
            vmem_limit_bytes=(48 * 1024 * 1024) if TB > 512 else None),
        cost_estimate=cost,
    )(x, w1_bf, b1_folded, w2_bf, b2, w3_row, b3_s)


def init_params(key, D):
    """Deterministic synthetic params (shapes from Lr.__init__, stored in
    (in, out) layout, i.e. y = x @ W + b). gamma/beta are non-trivial so the
    LayerNorm-affine folding path actually gets exercised."""
    ks = jax.random.split(key, 8)
    gamma = 1.0 + 0.1 * jax.random.normal(ks[0], (1, D), jnp.float32)
    beta = 0.05 * jax.random.normal(ks[1], (1, D), jnp.float32)
    w1 = jax.random.normal(ks[2], (D, 1024), jnp.float32) * 0.02
    b1 = jax.random.normal(ks[3], (1, 1024), jnp.float32) * 0.02
    w2 = jax.random.normal(ks[4], (1024, 512), jnp.float32) * 0.02
    b2 = jax.random.normal(ks[5], (1, 512), jnp.float32) * 0.02
    w3 = jax.random.normal(ks[6], (512, 1), jnp.float32) * 0.02
    b3 = jax.random.normal(ks[7], (1, 1), jnp.float32) * 0.02
    return (gamma, beta, w1, b1, w2, b2, w3, b3)


def lr_reference_f32(seq, params):
    """Pure-f32 JAX reference of the PyTorch forward (module semantics)."""
    gamma, beta, w1, b1, w2, b2, w3, b3 = params
    x = jnp.squeeze(seq, axis=1)
    mean = jnp.mean(x, axis=-1, keepdims=True)
    var = jnp.mean((x - mean) ** 2, axis=-1, keepdims=True)
    xn = (x - mean) / jnp.sqrt(var + LN_EPS) * gamma + beta
    h1 = jnp.tanh(xn @ w1 + b1)
    h2 = jnp.tanh(h1 @ w2 + b2)
    return h2 @ w3 + b3


def lr_reference_matched(seq, params, bf16_tanh):
    """Reference that mirrors the kernel's mixed-precision numerics exactly."""
    gamma, beta, w1, b1, w2, b2, w3, b3 = params
    x = jnp.squeeze(seq, axis=1)
    D = x.shape[1]
    w1_bf = (w1 * gamma.reshape(D, 1)).astype(jnp.bfloat16)
    b1_f = beta @ w1 + b1
    w2_bf = w2.astype(jnp.bfloat16)
    mean = jnp.mean(x, axis=-1, keepdims=True)
    xc = x - mean
    var = jnp.mean(xc * xc, axis=-1, keepdims=True)
    xn = xc * jax.lax.rsqrt(var + LN_EPS)
    a1 = jnp.dot(xn.astype(jnp.bfloat16), w1_bf,
                 preferred_element_type=jnp.float32) + b1_f
    h1 = jnp.tanh(a1.astype(jnp.bfloat16)) if bf16_tanh else jnp.tanh(a1).astype(jnp.bfloat16)
    a2 = jnp.dot(h1, w2_bf, preferred_element_type=jnp.float32) + b2
    h2 = (jnp.tanh(a2.astype(jnp.bfloat16)).astype(jnp.float32)
          if bf16_tanh else jnp.tanh(a2))
    return jnp.sum(h2 * jnp.transpose(w3), axis=-1, keepdims=True) + b3


if __name__ == "__main__":
    key = jax.random.PRNGKey(0)
    k_in, k_par = jax.random.split(key)

    B, SEQ_LEN, D = 8, 1, 32          # input_seq_len=1 (squeezed), input_seq_dim=32
    seq = jax.random.normal(k_in, (B, SEQ_LEN, D), jnp.float32)
    params = init_params(k_par, D)

    bf16_tanh = _tpu_generation() >= 6

    logits = jax.block_until_ready(lr_forward(seq, params))
    ref_match = jax.block_until_ready(lr_reference_matched(seq, params, bf16_tanh))
    ref_f32 = jax.block_until_ready(lr_reference_f32(seq, params))

    assert logits.shape == (B, 1)
    assert bool(jnp.all(jnp.isfinite(logits)))
    # Tight check against the precision-matched reference (same numerics as kernel).
    assert jnp.allclose(logits, ref_match, atol=5e-3, rtol=5e-3), \
        float(jnp.max(jnp.abs(logits - ref_match)))
    # Loose check against the pure-f32 module semantics (bf16 weight/act rounding).
    assert jnp.allclose(logits, ref_f32, atol=3e-2, rtol=3e-2), \
        float(jnp.max(jnp.abs(logits - ref_f32)))
    print("KERNEL_OK")
</pallas_src>

<mosaic_0001>
module attributes {stable_mosaic.version = 11 : i64} {
  func.func @lr_kernel(%arg0: i32, %arg1: memref<8x32xf32, #tpu.memory_space<vmem>>, %arg2: memref<32x1024xbf16, #tpu.memory_space<vmem>>, %arg3: memref<1x1024xf32, #tpu.memory_space<vmem>>, %arg4: memref<1024x512xbf16, #tpu.memory_space<vmem>>, %arg5: memref<1x512xf32, #tpu.memory_space<vmem>>, %arg6: memref<1x512xf32, #tpu.memory_space<vmem>>, %arg7: memref<1xf32, #tpu.memory_space<smem>>, %arg8: memref<8x1xf32, #tpu.memory_space<vmem>>) attributes {dimension_semantics = [#tpu.dimension_semantics<parallel>], iteration_bounds = array<i64: 1>, scalar_prefetch = 0 : i64, scratch_operands = 0 : i64, tpu.core_type = #tpu.core_type<tc>, window_params = [{transform_indices = @transform_0, window_bounds = array<i64: 8, 32>}, {pipeline_mode = #tpu.pipeline_mode<synchronous>, transform_indices = @transform_1, window_bounds = array<i64: 32, 1024>}, {pipeline_mode = #tpu.pipeline_mode<synchronous>, transform_indices = @transform_2, window_bounds = array<i64: 1, 1024>}, {pipeline_mode = #tpu.pipeline_mode<synchronous>, transform_indices = @transform_3, window_bounds = array<i64: 1024, 512>}, {pipeline_mode = #tpu.pipeline_mode<synchronous>, transform_indices = @transform_4, window_bounds = array<i64: 1, 512>}, {pipeline_mode = #tpu.pipeline_mode<synchronous>, transform_indices = @transform_5, window_bounds = array<i64: 1, 512>}, {transform_indices = @transform_6, window_bounds = array<i64: 1>}, {transform_indices = @transform_7, window_bounds = array<i64: 8, 1>}]} {
    %c0 = arith.constant 0 : index
    %c0_0 = arith.constant 0 : index
    %0 = vector.load %arg1[%c0, %c0_0] : memref<8x32xf32, #tpu.memory_space<vmem>>, vector<8x32xf32>
    %cst = arith.constant dense<0.000000e+00> : vector<8xf32>
    %1 = vector.multi_reduction <add>, %0, %cst [1] : vector<8x32xf32> to vector<8xf32>
    %2 = vector.shape_cast %1 : vector<8xf32> to vector<8x1xf32>
    %cst_1 = arith.constant 3.200000e+01 : f32
    %3 = vector.broadcast %cst_1 : f32 to vector<8x1xf32>
    %4 = arith.divf %2, %3 : vector<8x1xf32>
    %5 = vector.broadcast %4 : vector<8x1xf32> to vector<8x32xf32>
    %6 = arith.subf %0, %5 : vector<8x32xf32>
    %7 = arith.mulf %6, %6 : vector<8x32xf32>
    %cst_2 = arith.constant dense<0.000000e+00> : vector<8xf32>
    %8 = vector.multi_reduction <add>, %7, %cst_2 [1] : vector<8x32xf32> to vector<8xf32>
    %9 = vector.shape_cast %8 : vector<8xf32> to vector<8x1xf32>
    %cst_3 = arith.constant 3.200000e+01 : f32
    %10 = vector.broadcast %cst_3 : f32 to vector<8x1xf32>
    %11 = arith.divf %9, %10 : vector<8x1xf32>
    %cst_4 = arith.constant 9.99999974E-6 : f32
    %12 = vector.broadcast %cst_4 : f32 to vector<8x1xf32>
    %13 = arith.addf %11, %12 : vector<8x1xf32>
    %14 = math.rsqrt %13 : vector<8x1xf32>
    %15 = vector.broadcast %14 : vector<8x1xf32> to vector<8x32xf32>
    %16 = arith.mulf %6, %15 : vector<8x32xf32>
    %17 = arith.truncf %16 : vector<8x32xf32> to vector<8x32xbf16>
    %c0_5 = arith.constant 0 : index
    %c0_6 = arith.constant 0 : index
    %18 = vector.load %arg2[%c0_5, %c0_6] : memref<32x1024xbf16, #tpu.memory_space<vmem>>, vector<32x1024xbf16>
    %cst_7 = arith.constant dense<0.000000e+00> : vector<8x1024xf32>
    %19 = tpu.matmul %17, %18, %cst_7 {dimension_numbers = #tpu.dot_dimension_numbers<[1], [0], [0], [1], [0, 0, 1, 1], [], []>} : vector<8x32xbf16>, vector<32x1024xbf16>, vector<8x1024xf32> -> vector<8x1024xf32>
    %c0_8 = arith.constant 0 : index
    %c0_9 = arith.constant 0 : index
    %20 = vector.load %arg3[%c0_8, %c0_9] : memref<1x1024xf32, #tpu.memory_space<vmem>>, vector<1x1024xf32>
    %21 = vector.broadcast %20 : vector<1x1024xf32> to vector<8x1024xf32>
    %22 = arith.addf %19, %21 : vector<8x1024xf32>
    %23 = arith.truncf %22 : vector<8x1024xf32> to vector<8x1024xbf16>
    %24 = math.tanh %23 : vector<8x1024xbf16>
    %c0_10 = arith.constant 0 : index
    %c0_11 = arith.constant 0 : index
    %25 = vector.load %arg4[%c0_10, %c0_11] : memref<1024x512xbf16, #tpu.memory_space<vmem>>, vector<1024x512xbf16>
    %cst_12 = arith.constant dense<0.000000e+00> : vector<8x512xf32>
    %26 = tpu.matmul %24, %25, %cst_12 {dimension_numbers = #tpu.dot_dimension_numbers<[1], [0], [0], [1], [0, 0, 1, 1], [], []>} : vector<8x1024xbf16>, vector<1024x512xbf16>, vector<8x512xf32> -> vector<8x512xf32>
    %c0_13 = arith.constant 0 : index
    %c0_14 = arith.constant 0 : index
    %27 = vector.load %arg5[%c0_13, %c0_14] : memref<1x512xf32, #tpu.memory_space<vmem>>, vector<1x512xf32>
    %28 = vector.broadcast %27 : vector<1x512xf32> to vector<8x512xf32>
    %29 = arith.addf %26, %28 : vector<8x512xf32>
    %30 = arith.truncf %29 : vector<8x512xf32> to vector<8x512xbf16>
    %31 = math.tanh %30 : vector<8x512xbf16>
    %32 = arith.extf %31 : vector<8x512xbf16> to vector<8x512xf32>
    %c0_15 = arith.constant 0 : index
    %c0_16 = arith.constant 0 : index
    %33 = vector.load %arg6[%c0_15, %c0_16] : memref<1x512xf32, #tpu.memory_space<vmem>>, vector<1x512xf32>
    %34 = vector.broadcast %33 : vector<1x512xf32> to vector<8x512xf32>
    %35 = arith.mulf %32, %34 : vector<8x512xf32>
    %cst_17 = arith.constant dense<0.000000e+00> : vector<8xf32>
    %36 = vector.multi_reduction <add>, %35, %cst_17 [1] : vector<8x512xf32> to vector<8xf32>
    %37 = vector.shape_cast %36 : vector<8xf32> to vector<8x1xf32>
    %c0_18 = arith.constant 0 : index
    %38 = memref.load %arg7[%c0_18] : memref<1xf32, #tpu.memory_space<smem>>
    %39 = vector.broadcast %38 : f32 to vector<8x1xf32>
    %40 = arith.addf %37, %39 : vector<8x1xf32>
    %c0_19 = arith.constant 0 : index
    %c0_20 = arith.constant 0 : index
    %41 = vector.load %arg8[%c0_19, %c0_20] : memref<8x1xf32, #tpu.memory_space<vmem>>, vector<8x1xf32>
    tpu.vector_store %arg8[%c0_19, %c0_20], %40 {strides = array<i32>} : memref<8x1xf32, #tpu.memory_space<vmem>>, vector<8x1xf32>,
    return
  }
  func.func @transform_0(%arg0: i32) -> (i32, i32) {
    %c0_i32 = arith.constant 0 : i32
    %c0_i32_0 = arith.constant 0 : i32
    return %arg0, %c0_i32 : i32, i32
  }
  func.func @transform_1(%arg0: i32) -> (i32, i32) {
    %c0_i32 = arith.constant 0 : i32
    %c0_i32_0 = arith.constant 0 : i32
    %c0_i32_1 = arith.constant 0 : i32
    return %c0_i32, %c0_i32_0 : i32, i32
  }
  func.func @transform_2(%arg0: i32) -> (i32, i32) {
    %c0_i32 = arith.constant 0 : i32
    %c0_i32_0 = arith.constant 0 : i32
    %c0_i32_1 = arith.constant 0 : i32
    return %c0_i32, %c0_i32_0 : i32, i32
  }
  func.func @transform_3(%arg0: i32) -> (i32, i32) {
    %c0_i32 = arith.constant 0 : i32
    %c0_i32_0 = arith.constant 0 : i32
    %c0_i32_1 = arith.constant 0 : i32
    return %c0_i32, %c0_i32_0 : i32, i32
  }
  func.func @transform_4(%arg0: i32) -> (i32, i32) {
    %c0_i32 = arith.constant 0 : i32
    %c0_i32_0 = arith.constant 0 : i32
    %c0_i32_1 = arith.constant 0 : i32
    return %c0_i32, %c0_i32_0 : i32, i32
  }
  func.func @transform_5(%arg0: i32) -> (i32, i32) {
    %c0_i32 = arith.constant 0 : i32
    %c0_i32_0 = arith.constant 0 : i32
    %c0_i32_1 = arith.constant 0 : i32
    return %c0_i32, %c0_i32_0 : i32, i32
  }
  func.func @transform_6(%arg0: i32) -> i32 {
    %c0_i32 = arith.constant 0 : i32
    %c0_i32_0 = arith.constant 0 : i32
    return %c0_i32 : i32
  }
  func.func @transform_7(%arg0: i32) -> (i32, i32) {
    %c0_i32 = arith.constant 0 : i32
    %c0_i32_0 = arith.constant 0 : i32
    return %arg0, %c0_i32 : i32, i32
  }
}

</mosaic_0001>

<bundles_post_ra>
// kernel: tpu_custom_call.1
= control target key start
LH: loop header
LB: loop body
LE: loop exit
PB: predicated region body
PF: predicated region fallthrough
CT: control target
= control target key end

     0   :  { %13 = vsyncpa [#allocation4], 0  ;;  %s3297_s0 = inlined_call_operand.hbm [shape: f32[8,32], index: 0, kind: input, shape index: {}]   ;;  %s3298_s1 = inlined_call_operand.hbm [shape: bf16[32,1024], index: 1, kind: input, shape index: {}]   ;;  %s3299_s2 = inlined_call_operand.vmem [shape: f32[1,1024], index: 2, kind: input, shape index: {}]   ;;  %s3300_s3 = inlined_call_operand.hbm [shape: bf16[1024,512], index: 3, kind: input, shape index: {}]   ;;  %s3301_s4 = inlined_call_operand.vmem [shape: f32[1,512], index: 4, kind: input, shape index: {}]   ;;  %s3302_s5 = inlined_call_operand.vmem [shape: f32[1,512], index: 5, kind: input, shape index: {}]   ;;  %s3303_s6 = inlined_call_operand.<no memory space> [shape: f32[1], index: 6, kind: input, shape index: {}]   ;;  %s3304_s7 = inlined_call_operand.vmem [shape: f32[8,1], index: 7, kind: output, shape index: {}]  }
   0x1   :  { %14 = vsyncpa [#allocation6], 0  ;;  %s3137_s24 = smov [#allocation5]   ;;  %s3067_s28 = scalar_lea.hbm %s3298_s1, 2048 }
   0x2   :  { %s30_s25 = sshll.u32 %s3137_s24, 4  ;;  %p3068_p0 = scmp.ne.s32.totalorder %s3298_s1, %s3067_s28  ;;  %s31_s25 = int_to_ptr.vmem [resolvable:$true] %s30_s25 }
   0x3   :  { %p3071_p1 = scmp.lt.u32.totalorder %s3067_s28, %s3298_s1 }
   0x5   :  { %p3073_p2 = pnand %p3071_p1, %p3068_p0 }
   0x7   :  { %3076 = shalt.err (!%p3073_p2)
}
   0x8   :  { %s3077_s10 = scalar_lea.vmem %s31_s25, 2048  ;;  %p3082_p4 = scmp.lt.s32.totalorder %s31_s25, %s31_s25 }
   0x9   :  { %p3078_p3 = scmp.ne.s32.totalorder %s31_s25, %s3077_s10  ;;  %p3083_p5 = scmp.lt.s32.totalorder %s3077_s10, %s3077_s10 }
   0xb   :  { %p3084_p6 = por %p3083_p5, %p3082_p4 }
   0xd   :  { %p3085_p7 = pnand %p3084_p6, %p3078_p3 }
   0xf   :  { %3088 = shalt.err (!%p3085_p7)
}
  0x10   :  { %s3138_s11 = smov 512   ;;  %s3139_s12 = smov 32  }
  0x11   :  { %36 = dma.hbm_to_vmem [thread:$0]  %s3298_s1, 2048, %s31_s25, [#allocation6], %s3138_s11, %s3138_s11, %s3139_s12  }
  0x12   :  { %s3140_s15 = smov [#allocation3]   ;;  %s3141_s17 = smov [#allocation7]  }
  0x13   :  { %s21_s16 = sshll.u32 %s3140_s15, 4  ;;  %s44_s18 = sshll.u32 %s3141_s17, 4  ;;  %s22_s16 = int_to_ptr.vmem [resolvable:$true] %s21_s16  ;;  %s45_s18 = int_to_ptr.vmem [resolvable:$true] %s44_s18 }
  0x14   :  { %s3089_s21 = scalar_lea.hbm %s3297_s0, 128 }
  0x15   :  { %p3090_p8 = scmp.ne.s32.totalorder %s3297_s0, %s3089_s21  ;;  %p3093_p9 = scmp.lt.u32.totalorder %s3089_s21, %s3297_s0 }
  0x17   :  { %p3095_p10 = pnand %p3093_p9, %p3090_p8 }
  0x19   :  { %3098 = shalt.err (!%p3095_p10)
}
  0x1a   :  { %s3099_s1 = scalar_lea.vmem %s22_s16, 128  ;;  %p3104_p12 = scmp.lt.s32.totalorder %s22_s16, %s22_s16 }
  0x1b   :  { %p3100_p11 = scmp.ne.s32.totalorder %s22_s16, %s3099_s1  ;;  %p3105_p13 = scmp.lt.s32.totalorder %s3099_s1, %s3099_s1 }
  0x1d   :  { %p3106_p0 = por %p3105_p13, %p3104_p12 }
  0x1f   :  { %p3107_p1 = pnand %p3106_p0, %p3100_p11 }
  0x21   :  { %3110 = shalt.err (!%p3107_p1)
}
  0x22   :  { %24 = dma.hbm_to_vmem [thread:$0]  %s3297_s0, 128, %s22_s16, [#allocation4]  }
  0x23   :  { %s3111_s30 = scalar_lea.hbm %s3300_s3, 32768 }
  0x24   :  { %p3112_p2 = scmp.ne.s32.totalorder %s3300_s3, %s3111_s30  ;;  %p3115_p3 = scmp.lt.u32.totalorder %s3111_s30, %s3300_s3 }
  0x26   :  { %p3117_p4 = pnand %p3115_p3, %p3112_p2 }
  0x28   :  { %3120 = shalt.err (!%p3117_p4)
}
  0x29   :  { %s3121_s12 = scalar_lea.vmem %s45_s18, 32768  ;;  %p3126_p6 = scmp.lt.s32.totalorder %s45_s18, %s45_s18 }
  0x2a   :  { %p3122_p5 = scmp.ne.s32.totalorder %s45_s18, %s3121_s12  ;;  %p3127_p7 = scmp.lt.s32.totalorder %s3121_s12, %s3121_s12 }
  0x2c   :  { %p3128_p8 = por %p3127_p7, %p3126_p6 }
  0x2e   :  { %p3129_p9 = pnand %p3128_p8, %p3122_p5 }
  0x30   :  { %3132 = shalt.err (!%p3129_p9)
}
  0x31   :  { %s3142_s0 = smov 256   ;;  %s3143_s13 = smov 16  }
  0x32   :  { %50 = dma.hbm_to_vmem [thread:$0]  %s3300_s3, 32768, %s45_s18, [#allocation6], %s3142_s0, %s3142_s0, %s3143_s13  }
  0x33   :  { %3133 = dma.done.wait [#allocation4], 128  }
  0x34   :  { %3134 = vsyncadd [#allocation4], 4294967168 }
  0x35   :  { %3135 = dma.done.wait [#allocation6], 34816  }
  0x36   :  { %3136 = vsyncadd [#allocation6], 4294932480  ;;  %vm68_vm0 = vcmask 261120   ;;  %v67_v0 = vld [vmem:[#allocation3] sm:$0xff]  ;;  %v84_v7 = vld [vmem:[#allocation5] sm:$0xff]  ;;  %v3144_v15 = vmov 0  }
  0x37   :  { %v69_v1 = vsel %vm68_vm0, %v67_v0, 0.0  ;;  %v88_v8 = vld [vmem:[#allocation5 + $0x20] sm:$0xff]  ;;  %v85_v9 = vld [vmem:[#allocation5 + $0x8] sm:$0xff]  ;;  %257 = vmatprep.mubr.bf16.mxu0 %v3144_v15  ;;  %298 = vmatprep.mubr.bf16.mxu1 %v3144_v15  ;;  %v86_v24 = vld [vmem:[#allocation5 + $0x10] sm:$0xff]  ;;  %vm2337_vm1 = vcmask 7168  }
  0x38   :  { %70 = vadd.xlane.f32.xlu0 %v69_v1  ;;  %v2346_v10 = vcombine.high %v84_v7, %v88_v8  ;;  %v89_v11 = vld [vmem:[#allocation5 + $0x28] sm:$0xff]  ;;  %v2345_v12 = vcombine.low %v84_v7, %v88_v8  ;;  %v92_v13 = vld [vmem:[#allocation5 + $0x40] sm:$0xff]  ;;  %v90_v25 = vld [vmem:[#allocation5 + $0x30] sm:$0xff] }
  0x39   :  { %v96_v14 = vld [vmem:[#allocation5 + $0x60] sm:$0xff]  ;;  %v2348_v16 = vcombine.high %v85_v9, %v89_v11  ;;  %v2347_v17 = vcombine.low %v85_v9, %v89_v11  ;;  %v93_v19 = vld [vmem:[#allocation5 + $0x48] sm:$0xff]  ;;  %v87_v26 = vld [vmem:[#allocation5 + $0x18] sm:$0xff]  ;;  %v2350_v27 = vcombine.high %v86_v24, %v90_v25  ;;  %v2349_v29 = vcombine.low %v86_v24, %v90_v25 }
  0x3a   :  { %v2354_v18 = vcombine.high %v92_v13, %v96_v14  ;;  %v97_v20 = vld [vmem:[#allocation5 + $0x68] sm:$0xff]  ;;  %225 = vmatprep.subr.bf16.mxu0 %v2346_v10  ;;  %v2353_v22 = vcombine.low %v92_v13, %v96_v14  ;;  %v91_v28 = vld [vmem:[#allocation5 + $0x38] sm:$0xff]  ;;  %v94_v35 = vld [vmem:[#allocation5 + $0x50] sm:$0xff] }
  0x3b   :  { %v2356_v21 = vcombine.high %v93_v19, %v97_v20  ;;  %266 = vmatprep.subr.bf16.mxu1 %v2348_v16  ;;  %226 = vmatpush1.bf16.msra.mxu0 %v2345_v12  ;;  %v2355_v23 = vcombine.low %v93_v19, %v97_v20  ;;  %v2351_v30 = vcombine.low %v87_v26, %v91_v28  ;;  %v98_v37 = vld [vmem:[#allocation5 + $0x70] sm:$0xff]  ;;  %v95_v38 = vld [vmem:[#allocation5 + $0x58] sm:$0xff] }
  0x3c   :  { %267 = vmatpush1.bf16.msra.mxu1 %v2347_v17  ;;  %227 = vmatprep.subr.bf16.mxu0 %v2354_v18  ;;  %v2352_v31 = vcombine.high %v87_v26, %v91_v28  ;;  %v99_v39 = vld [vmem:[#allocation5 + $0x78] sm:$0xff]  ;;  %v2358_v42 = vcombine.high %v94_v35, %v98_v37  ;;  %v2357_v44 = vcombine.low %v94_v35, %v98_v37  ;;  %v2659_v46 = vld [vmem:[#allocation7 + $0x4] ss:$16 sps:$4 sm:$0xff]   ;;  %v2657_v48 = vld [vmem:[#allocation7] ss:$16 sps:$4 sm:$0xff]  }
  0x3d   :  { %268 = vmatprep.subr.bf16.mxu1 %v2356_v21  ;;  %v2360_v43 = vcombine.high %v95_v38, %v99_v39  ;;  %v2359_v45 = vcombine.low %v95_v38, %v99_v39  ;;  %v2662_v47 = vld [vmem:[#allocation7 + $0xc] ss:$16 sps:$4 sm:$0xff]   ;;  %v2660_v49 = vld [vmem:[#allocation7 + $0x8] ss:$16 sps:$4 sm:$0xff]   ;;  %v2665_v50 = vld [vmem:[#allocation7 + $0x24] ss:$16 sps:$4 sm:$0xff]  }
  0x3e   :  { %v2668_v51 = vld [vmem:[#allocation7 + $0x2c] ss:$16 sps:$4 sm:$0xff]   ;;  %v2663_v52 = vld [vmem:[#allocation7 + $0x20] ss:$16 sps:$4 sm:$0xff]   ;;  %v2666_v53 = vld [vmem:[#allocation7 + $0x28] ss:$16 sps:$4 sm:$0xff]  }
  0x3f   :  { %228 = vmatpush1.bf16.msra.mxu0 %v2353_v22  ;;  %v2671_v54 = vld [vmem:[#allocation7 + $0x44] ss:$16 sps:$4 sm:$0xff]   ;;  %v2674_v55 = vld [vmem:[#allocation7 + $0x4c] ss:$16 sps:$4 sm:$0xff]   ;;  %v2669_v56 = vld [vmem:[#allocation7 + $0x40] ss:$16 sps:$4 sm:$0xff]  }
  0x40   :  { %269 = vmatpush1.bf16.msra.mxu1 %v2355_v23  ;;  %307 = vmatprep.subr.bf16.mxu0 %v2350_v27  ;;  %v2672_v57 = vld [vmem:[#allocation7 + $0x48] ss:$16 sps:$4 sm:$0xff]   ;;  %v2677_v58 = vld [vmem:[#allocation7 + $0x64] ss:$16 sps:$4 sm:$0xff]   ;;  %v2680_v59 = vld [vmem:[#allocation7 + $0x6c] ss:$16 sps:$4 sm:$0xff]  }
  0x41   :  { %348 = vmatprep.subr.bf16.mxu1 %v2352_v31  ;;  %v2675_v60 = vld [vmem:[#allocation7 + $0x60] ss:$16 sps:$4 sm:$0xff]   ;;  %v2678_v61 = vld [vmem:[#allocation7 + $0x68] ss:$16 sps:$4 sm:$0xff]   ;;  %v2683_v62 = vld [vmem:[#allocation7 + $0x84] ss:$16 sps:$4 sm:$0xff]  }
  0x42   :  { %v2686_v63 = vld [vmem:[#allocation7 + $0x8c] ss:$16 sps:$4 sm:$0xff]   ;;  %v2684_v1 = vld [vmem:[#allocation7 + $0x88] ss:$16 sps:$4 sm:$0xff]   ;;  %v2693_v8 = vld [vmem:[#allocation7 + $0xc0] ss:$16 sps:$4 sm:$0xff]  }
  0x43   :  { %v2698_v7 = vld [vmem:[#allocation7 + $0xcc] ss:$16 sps:$4 sm:$0xff]   ;;  %v2696_v9 = vld [vmem:[#allocation7 + $0xc8] ss:$16 sps:$4 sm:$0xff]   ;;  %v2701_v10 = vld [vmem:[#allocation7 + $0xe4] ss:$16 sps:$4 sm:$0xff]  }
  0x44   :  { %v2704_v11 = vld [vmem:[#allocation7 + $0xec] ss:$16 sps:$4 sm:$0xff]   ;;  %v2699_v12 = vld [vmem:[#allocation7 + $0xe0] ss:$16 sps:$4 sm:$0xff]   ;;  %v2702_v13 = vld [vmem:[#allocation7 + $0xe8] ss:$16 sps:$4 sm:$0xff]  }
  0x45   :  { %v2707_v14 = vld [vmem:[#allocation7 + $0x104] ss:$16 sps:$4 sm:$0xff]   ;;  %v2705_v16 = vld [vmem:[#allocation7 + $0x100] ss:$16 sps:$4 sm:$0xff]   ;;  %v2708_v17 = vld [vmem:[#allocation7 + $0x108] ss:$16 sps:$4 sm:$0xff]  }
  0x46   :  { %v2713_v18 = vld [vmem:[#allocation7 + $0x124] ss:$16 sps:$4 sm:$0xff]   ;;  %v2716_v19 = vld [vmem:[#allocation7 + $0x12c] ss:$16 sps:$4 sm:$0xff]   ;;  %v2711_v20 = vld [vmem:[#allocation7 + $0x120] ss:$16 sps:$4 sm:$0xff]  }
  0x47   :  { %v2714_v21 = vld [vmem:[#allocation7 + $0x128] ss:$16 sps:$4 sm:$0xff]   ;;  %v2719_v22 = vld [vmem:[#allocation7 + $0x144] ss:$16 sps:$4 sm:$0xff]   ;;  %v2722_v23 = vld [vmem:[#allocation7 + $0x14c] ss:$16 sps:$4 sm:$0xff]  }
  0x48   :  { %v2717_v24 = vld [vmem:[#allocation7 + $0x140] ss:$16 sps:$4 sm:$0xff]   ;;  %v2720_v25 = vld [vmem:[#allocation7 + $0x148] ss:$16 sps:$4 sm:$0xff]   ;;  %v2725_v26 = vld [vmem:[#allocation7 + $0x164] ss:$16 sps:$4 sm:$0xff]  }
  0x49   :  { %v2728_v27 = vld [vmem:[#allocation7 + $0x16c] ss:$16 sps:$4 sm:$0xff]   ;;  %v2723_v28 = vld [vmem:[#allocation7 + $0x160] ss:$16 sps:$4 sm:$0xff]   ;;  %v2738_v37 = vld [vmem:[#allocation7 + $0x1a8] ss:$16 sps:$4 sm:$0xff]  }
  0x4a   :  { %v2734_v31 = vld [vmem:[#allocation7 + $0x18c] ss:$16 sps:$4 sm:$0xff]   ;;  %v2743_v38 = vld [vmem:[#allocation7 + $0x1c4] ss:$16 sps:$4 sm:$0xff]  }
  0x4b   :  { %v2740_v35 = vld [vmem:[#allocation7 + $0x1ac] ss:$16 sps:$4 sm:$0xff]  }
  0x4c   :  { %v2746_v39 = vld [vmem:[#allocation7 + $0x1cc] ss:$16 sps:$4 sm:$0xff]  }
  0xc5   :  { %v71_v2 = vpop.xlane.xlu0 %70 }
  0xc6   :  { %v73_v3 = vmul.f32 0.03125, %v71_v2  ;;  %v2689_v2 = vld [vmem:[#allocation7 + $0xa4] ss:$16 sps:$4 sm:$0xff]  }
  0xc8   :  { %v74_v4 = vsub.f32 %v67_v0, %v73_v3  ;;  %v2681_v0 = vld [vmem:[#allocation7 + $0x80] ss:$16 sps:$4 sm:$0xff]   ;;  %v2692_v3 = vld [vmem:[#allocation7 + $0xac] ss:$16 sps:$4 sm:$0xff]  }
  0xca   :  { %v75_v5 = vmul.f32 %v74_v4, %v74_v4 }
  0xcc   :  { %v76_v6 = vsel %vm68_vm0, %v75_v5, 0.0  ;;  %v2690_v5 = vld [vmem:[#allocation7 + $0xa8] ss:$16 sps:$4 sm:$0xff]  }
  0xcd   :  { %77 = vadd.xlane.f32.xlu0 %v76_v6  ;;  %v2695_v6 = vld [vmem:[#allocation7 + $0xc4] ss:$16 sps:$4 sm:$0xff]  }
 0x15a   :  { %v78_v32 = vpop.xlane.xlu0 %77 }
 0x15b   :  { %v79_v33 = vmul.f32 0.03125, %v78_v32  ;;  %v2729_v32 = vld [vmem:[#allocation7 + $0x180] ss:$16 sps:$4 sm:$0xff]  }
 0x15d   :  { %v80_v34 = vadd.f32 1e-05, %v79_v33  ;;  %v2732_v33 = vld [vmem:[#allocation7 + $0x188] ss:$16 sps:$4 sm:$0xff]  }
 0x15f   :  { %3041 = vrsqrt.f32 %v80_v34  ;;  %v2737_v34 = vld [vmem:[#allocation7 + $0x1a4] ss:$16 sps:$4 sm:$0xff]  }
 0x169   :  { %v3042_v36 = vpop.eup %3041 }
 0x16a   :  { %v82_v40 = vmul.f32 %v3042_v36, %v74_v4  ;;  %v2687_v4 = vld [vmem:[#allocation7 + $0xa0] ss:$16 sps:$4 sm:$0xff]  }
 0x16b   :  { %v2735_v36 = vld [vmem:[#allocation7 + $0x1a0] ss:$16 sps:$4 sm:$0xff]  }
 0x16c   :  { %v83_v41 = vpack.c.bf16 %v82_v40, %v82_v40  ;;  %v2741_v40 = vld [vmem:[#allocation7 + $0x1c0] ss:$16 sps:$4 sm:$0xff]  }
 0x16e   :  { %2361 = vmatmul.mubr.msk.bf16.vlgmr.msra.gmra.mrb[0].mxu0 %vm68_vm0, %v83_v41  ;;  %2362 = vmatmul.mubr.msk.bf16.vlgmr.msra.gmra.mrb[0].mxu1 %vm68_vm0, %v83_v41 }
 0x16f   :  { %308 = vmatpush1.bf16.msra.mxu0 %v2349_v29  ;;  %349 = vmatpush1.bf16.msra.mxu1 %v2351_v30  ;;  %v2726_v29 = vld [vmem:[#allocation7 + $0x168] ss:$16 sps:$4 sm:$0xff]   ;;  %v2731_v30 = vld [vmem:[#allocation7 + $0x184] ss:$16 sps:$4 sm:$0xff]  }
 0x170   :  { %309 = vmatprep.subr.bf16.mxu0 %v2358_v42  ;;  %350 = vmatprep.subr.bf16.mxu1 %v2360_v43  ;;  %v2749_v42 = vld [vmem:[#allocation7 + $0x1e4] ss:$16 sps:$4 sm:$0xff]   ;;  %v2752_v43 = vld [vmem:[#allocation7 + $0x1ec] ss:$16 sps:$4 sm:$0xff]  }
 0x171   :  { %339 = vmatprep.mubr.bf16.mxu0 %v3144_v15  ;;  %380 = vmatprep.mubr.bf16.mxu1 %v3144_v15  ;;  %v2710_v15 = vld [vmem:[#allocation7 + $0x10c] ss:$16 sps:$4 sm:$0xff]  }
 0x173   :  { %310 = vmatpush1.bf16.msra.mxu0 %v2357_v44  ;;  %351 = vmatpush1.bf16.msra.mxu1 %v2359_v45  ;;  %v2747_v44 = vld [vmem:[#allocation7 + $0x1e0] ss:$16 sps:$4 sm:$0xff]   ;;  %v2750_v45 = vld [vmem:[#allocation7 + $0x1e8] ss:$16 sps:$4 sm:$0xff]  }
 0x174   :  { %1963 = vmatprep.subr.bf16.mxu0 %v2659_v46  ;;  %2127 = vmatprep.subr.bf16.mxu1 %v2662_v47  ;;  %v2755_v46 = vld [vmem:[#allocation7 + $0x204] ss:$16 sps:$4 sm:$0xff]   ;;  %v2758_v47 = vld [vmem:[#allocation7 + $0x20c] ss:$16 sps:$4 sm:$0xff]  }
 0x176   :  { %2363 = vmatmul.mubr.msk.bf16.vlgmr.msra.gmra.mrb[4].mxu0 %vm68_vm0, %v83_v41  ;;  %2364 = vmatmul.mubr.msk.bf16.vlgmr.msra.gmra.mrb[4].mxu1 %vm68_vm0, %v83_v41  ;;  %v2744_v41 = vld [vmem:[#allocation7 + $0x1c8] ss:$16 sps:$4 sm:$0xff]  }
 0x177   :  { %1964 = vmatpush1.bf16.msra.mxu0 %v2657_v48  ;;  %2128 = vmatpush1.bf16.msra.mxu1 %v2660_v49  ;;  %v102_v48 = vlaneseq }
 0x178   :  { %1965 = vmatprep.subr.bf16.mxu0 %v2665_v50  ;;  %2129 = vmatprep.subr.bf16.mxu1 %v2668_v51  ;;  %v3235_v51 = vld [vmem:[%s3299_s2] sm:$0xff] }
 0x179   :  { %v3227_v49 = vshrl.u32 %v102_v48, 7  ;;  %v2803_v48 = vld [vmem:[#allocation7 + $0x304] ss:$16 sps:$4 sm:$0xff]  }
 0x17b   :  { %1966 = vmatpush1.bf16.msra.mxu0 %v2663_v52  ;;  %2130 = vmatpush1.bf16.msra.mxu1 %v2666_v53  ;;  %v3230_v50 = vsub.s32 0, %v3227_v49  ;;  %v3238_v52 = vsub.s32 1, %v3227_v49  ;;  %v3241_v53 = vsub.s32 3, %v3227_v49 }
 0x17c   :  { %1967 = vmatprep.subr.bf16.mxu0 %v2671_v54  ;;  %2131 = vmatprep.subr.bf16.mxu1 %v2674_v55 }
 0x17d   :  { %v105_v54 = vrot.slane %v3235_v51, %v3230_v50  ;;  %v109_v55 = vrot.slane %v3235_v51, %v3238_v52 }
 0x17f   :  { %1968 = vmatpush1.bf16.msra.mxu0 %v2669_v56  ;;  %2132 = vmatpush1.bf16.msra.mxu1 %v2672_v57  ;;  %v117_v56 = vrot.slane %v3235_v51, %v3241_v53 }
 0x180   :  { %1969 = vmatprep.subr.bf16.mxu0 %v2677_v58  ;;  %2133 = vmatprep.subr.bf16.mxu1 %v2680_v59 }
 0x183   :  { %1970 = vmatpush1.bf16.msra.mxu0 %v2675_v60  ;;  %2134 = vmatpush1.bf16.msra.mxu1 %v2678_v61 }
 0x184   :  { %1971 = vmatprep.subr.bf16.mxu0 %v2683_v62  ;;  %2135 = vmatprep.subr.bf16.mxu1 %v2686_v63 }
 0x187   :  { %1972 = vmatpush1.bf16.msra.mxu0 %v2681_v0  ;;  %2136 = vmatpush1.bf16.msra.mxu1 %v2684_v1 }
 0x188   :  { %1973 = vmatprep.subr.bf16.mxu0 %v2689_v2  ;;  %2137 = vmatprep.subr.bf16.mxu1 %v2692_v3 }
 0x18b   :  { %1974 = vmatpush1.bf16.msra.mxu0 %v2687_v4  ;;  %2138 = vmatpush1.bf16.msra.mxu1 %v2690_v5 }
 0x18c   :  { %1975 = vmatprep.subr.bf16.mxu0 %v2695_v6  ;;  %2139 = vmatprep.subr.bf16.mxu1 %v2698_v7 }
 0x18f   :  { %1976 = vmatpush1.bf16.msra.mxu0 %v2693_v8  ;;  %2140 = vmatpush1.bf16.msra.mxu1 %v2696_v9 }
 0x190   :  { %1977 = vmatprep.subr.bf16.mxu0 %v2701_v10  ;;  %2141 = vmatprep.subr.bf16.mxu1 %v2704_v11 }
 0x193   :  { %1978 = vmatpush1.bf16.msra.mxu0 %v2699_v12  ;;  %2142 = vmatpush1.bf16.msra.mxu1 %v2702_v13 }
 0x194   :  { %1979 = vmatprep.subr.bf16.mxu0 %v2707_v14  ;;  %2143 = vmatprep.subr.bf16.mxu1 %v2710_v15  ;;  %v2753_v15 = vld [vmem:[#allocation7 + $0x200] ss:$16 sps:$4 sm:$0xff]  }
 0x197   :  { %1980 = vmatpush1.bf16.msra.mxu0 %v2705_v16  ;;  %2144 = vmatpush1.bf16.msra.mxu1 %v2708_v17  ;;  %v2756_v16 = vld [vmem:[#allocation7 + $0x208] ss:$16 sps:$4 sm:$0xff]  }
 0x198   :  { %1981 = vmatprep.subr.bf16.mxu0 %v2713_v18  ;;  %2145 = vmatprep.subr.bf16.mxu1 %v2716_v19  ;;  %v2761_v19 = vld [vmem:[#allocation7 + $0x224] ss:$16 sps:$4 sm:$0xff]  }
 0x19b   :  { %1982 = vmatpush1.bf16.msra.mxu0 %v2711_v20  ;;  %2146 = vmatpush1.bf16.msra.mxu1 %v2714_v21  ;;  %v2764_v20 = vld [vmem:[#allocation7 + $0x22c] ss:$16 sps:$4 sm:$0xff]  }
 0x19c   :  { %1983 = vmatprep.subr.bf16.mxu0 %v2719_v22  ;;  %2147 = vmatprep.subr.bf16.mxu1 %v2722_v23  ;;  %v2759_v22 = vld [vmem:[#allocation7 + $0x220] ss:$16 sps:$4 sm:$0xff]   ;;  %v2762_v23 = vld [vmem:[#allocation7 + $0x228] ss:$16 sps:$4 sm:$0xff]  }
 0x19f   :  { %1984 = vmatpush1.bf16.msra.mxu0 %v2717_v24  ;;  %2148 = vmatpush1.bf16.msra.mxu1 %v2720_v25  ;;  %v2767_v24 = vld [vmem:[#allocation7 + $0x244] ss:$16 sps:$4 sm:$0xff]   ;;  %v2770_v25 = vld [vmem:[#allocation7 + $0x24c] ss:$16 sps:$4 sm:$0xff]  }
 0x1a0   :  { %1985 = vmatprep.subr.bf16.mxu0 %v2725_v26  ;;  %2149 = vmatprep.subr.bf16.mxu1 %v2728_v27  ;;  %v2765_v26 = vld [vmem:[#allocation7 + $0x240] ss:$16 sps:$4 sm:$0xff]   ;;  %v2768_v27 = vld [vmem:[#allocation7 + $0x248] ss:$16 sps:$4 sm:$0xff]  }
 0x1a3   :  { %1986 = vmatpush1.bf16.msra.mxu0 %v2723_v28  ;;  %2150 = vmatpush1.bf16.msra.mxu1 %v2726_v29  ;;  %v2773_v28 = vld [vmem:[#allocation7 + $0x264] ss:$16 sps:$4 sm:$0xff]   ;;  %v2776_v29 = vld [vmem:[#allocation7 + $0x26c] ss:$16 sps:$4 sm:$0xff]  }
 0x1a4   :  { %1987 = vmatprep.subr.bf16.mxu0 %v2731_v30  ;;  %2151 = vmatprep.subr.bf16.mxu1 %v2734_v31  ;;  %v2771_v30 = vld [vmem:[#allocation7 + $0x260] ss:$16 sps:$4 sm:$0xff]   ;;  %v2774_v31 = vld [vmem:[#allocation7 + $0x268] ss:$16 sps:$4 sm:$0xff]  }
 0x1a7   :  { %1988 = vmatpush1.bf16.msra.mxu0 %v2729_v32  ;;  %2152 = vmatpush1.bf16.msra.mxu1 %v2732_v33  ;;  %v2779_v32 = vld [vmem:[#allocation7 + $0x284] ss:$16 sps:$4 sm:$0xff]   ;;  %v2782_v33 = vld [vmem:[#allocation7 + $0x28c] ss:$16 sps:$4 sm:$0xff]  }
 0x1a8   :  { %1989 = vmatprep.subr.bf16.mxu0 %v2737_v34  ;;  %2153 = vmatprep.subr.bf16.mxu1 %v2740_v35  ;;  %v2777_v34 = vld [vmem:[#allocation7 + $0x280] ss:$16 sps:$4 sm:$0xff]   ;;  %v2780_v35 = vld [vmem:[#allocation7 + $0x288] ss:$16 sps:$4 sm:$0xff]  }
 0x1ab   :  { %1990 = vmatpush1.bf16.msra.mxu0 %v2735_v36  ;;  %2154 = vmatpush1.bf16.msra.mxu1 %v2738_v37  ;;  %v2785_v36 = vld [vmem:[#allocation7 + $0x2a4] ss:$16 sps:$4 sm:$0xff]   ;;  %v2788_v37 = vld [vmem:[#allocation7 + $0x2ac] ss:$16 sps:$4 sm:$0xff]  }
 0x1ac   :  { %1991 = vmatprep.subr.bf16.mxu0 %v2743_v38  ;;  %2155 = vmatprep.subr.bf16.mxu1 %v2746_v39  ;;  %v2783_v38 = vld [vmem:[#allocation7 + $0x2a0] ss:$16 sps:$4 sm:$0xff]   ;;  %v2786_v39 = vld [vmem:[#allocation7 + $0x2a8] ss:$16 sps:$4 sm:$0xff]  }
 0x1af   :  { %1992 = vmatpush1.bf16.msra.mxu0 %v2741_v40  ;;  %2156 = vmatpush1.bf16.msra.mxu1 %v2744_v41  ;;  %v2791_v40 = vld [vmem:[#allocation7 + $0x2c4] ss:$16 sps:$4 sm:$0xff]   ;;  %v2794_v41 = vld [vmem:[#allocation7 + $0x2cc] ss:$16 sps:$4 sm:$0xff]  }
 0x1b0   :  { %1993 = vmatprep.subr.bf16.mxu0 %v2749_v42  ;;  %2157 = vmatprep.subr.bf16.mxu1 %v2752_v43  ;;  %v2789_v42 = vld [vmem:[#allocation7 + $0x2c0] ss:$16 sps:$4 sm:$0xff]   ;;  %v2792_v43 = vld [vmem:[#allocation7 + $0x2c8] ss:$16 sps:$4 sm:$0xff]  }
 0x1b3   :  { %1994 = vmatpush1.bf16.msra.mxu0 %v2747_v44  ;;  %2158 = vmatpush1.bf16.msra.mxu1 %v2750_v45  ;;  %v2797_v44 = vld [vmem:[#allocation7 + $0x2e4] ss:$16 sps:$4 sm:$0xff]   ;;  %v2800_v45 = vld [vmem:[#allocation7 + $0x2ec] ss:$16 sps:$4 sm:$0xff]  }
 0x1b4   :  { %2004 = vmatprep.subr.bf16.mxu0 %v2755_v46  ;;  %2168 = vmatprep.subr.bf16.mxu1 %v2758_v47  ;;  %v2795_v46 = vld [vmem:[#allocation7 + $0x2e0] ss:$16 sps:$4 sm:$0xff]   ;;  %v2798_v47 = vld [vmem:[#allocation7 + $0x2e8] ss:$16 sps:$4 sm:$0xff]  }
 0x241   :  { %v259_v57 = vpop.f32.mrb[0].mxu0  ;;  %v3249_v58 = vpop.f32.mrb[0].mxu1 }
 0x242   :  { %v260_v59 = vadd.f32 %v259_v57, %v105_v54  ;;  %v261_v60 = vpop.f32.mrb[1].mxu0  ;;  %v302_v61 = vpop.f32.mrb[1].mxu1  ;;  %v2806_v54 = vld [vmem:[#allocation7 + $0x30c] ss:$16 sps:$4 sm:$0xff]   ;;  %v2809_v57 = vld [vmem:[#allocation7 + $0x324] ss:$16 sps:$4 sm:$0xff]  }
 0x243   :  { %v262_v62 = vadd.f32 %v261_v60, %v109_v55  ;;  %v303_v63 = vadd.f32 %v302_v61, %v117_v56  ;;  %v263_v0 = vpop.f32.mrb[2].mxu0  ;;  %v304_v1 = vpop.f32.mrb[2].mxu1  ;;  %v2801_v55 = vld [vmem:[#allocation7 + $0x300] ss:$16 sps:$4 sm:$0xff]   ;;  %v2804_v56 = vld [vmem:[#allocation7 + $0x308] ss:$16 sps:$4 sm:$0xff]  }
 0x244   :  { %v264_v2 = vpop.f32.mrb[3].mxu0  ;;  %v305_v3 = vpop.f32.mrb[3].mxu1  ;;  %v389_v4 = vpack.c.bf16 %v260_v59, %v260_v59  ;;  %v2812_v59 = vld [vmem:[#allocation7 + $0x32c] ss:$16 sps:$4 sm:$0xff]   ;;  %v2807_v60 = vld [vmem:[#allocation7 + $0x320] ss:$16 sps:$4 sm:$0xff]  }
 0x245   :  { %v390_v5 = vpack.c.bf16 %v262_v62, %v262_v62  ;;  %v392_v6 = vpack.c.bf16 %v303_v63, %v303_v63  ;;  %v2810_v61 = vld [vmem:[#allocation7 + $0x328] ss:$16 sps:$4 sm:$0xff]   ;;  %v2815_v62 = vld [vmem:[#allocation7 + $0x344] ss:$16 sps:$4 sm:$0xff]   ;;  %v2818_v63 = vld [vmem:[#allocation7 + $0x34c] ss:$16 sps:$4 sm:$0xff]  }
 0x246   :  { %v3260_v0 = vsub.s32 2, %v3227_v49  ;;  %v124_v1 = vsub.s32 5, %v3227_v49  ;;  %v2813_v2 = vld [vmem:[#allocation7 + $0x340] ss:$16 sps:$4 sm:$0xff]   ;;  %v2816_v3 = vld [vmem:[#allocation7 + $0x348] ss:$16 sps:$4 sm:$0xff]  }
 0x247   :  { %3043 = vtanh.bf16 %v390_v5  ;;  %v2824_v5 = vld [vmem:[#allocation7 + $0x36c] ss:$16 sps:$4 sm:$0xff]  }
 0x248   :  { %3045 = vtanh.bf16 %v389_v4  ;;  %v2821_v4 = vld [vmem:[#allocation7 + $0x364] ss:$16 sps:$4 sm:$0xff]  }
 0x249   :  { %v3251_v7 = vpop.f32.mrb[4].mxu0  ;;  %v3253_v8 = vpop.f32.mrb[4].mxu1  ;;  %3047 = vtanh.bf16 %v392_v6  ;;  %v113_v6 = vrot.slane %v3235_v51, %v3260_v0 }
 0x24a   :  { %v3255_v9 = vpop.f32.mrb[5].mxu0  ;;  %v3257_v10 = vpop.f32.mrb[5].mxu1 }
 0x24b   :  { %v345_v11 = vpop.f32.mrb[6].mxu0  ;;  %v386_v12 = vpop.f32.mrb[6].mxu1 }
 0x24c   :  { %v346_v13 = vpop.f32.mrb[7].mxu0  ;;  %v387_v14 = vpop.f32.mrb[7].mxu1  ;;  %v125_v11 = vrot.slane %v3235_v51, %v124_v1  ;;  %v2819_v12 = vld [vmem:[#allocation7 + $0x360] ss:$16 sps:$4 sm:$0xff]   ;;  %v2887_v1 = vld [vmem:[#allocation7 + $0x4c4] ss:$16 sps:$4 sm:$0xff]  }
 0x24d   :  { %v2822_v13 = vld [vmem:[#allocation7 + $0x368] ss:$16 sps:$4 sm:$0xff]   ;;  %v2827_v14 = vld [vmem:[#allocation7 + $0x384] ss:$16 sps:$4 sm:$0xff]  }
 0x252   :  { %v3044_v17 = vpop.eup %3043 }
 0x253   :  { %v3046_v18 = vpop.eup %3045  ;;  %1995 = vmatprep.mubr.bf16.mxu0 %v3044_v17  ;;  %2159 = vmatprep.mubr.bf16.mxu1 %v3044_v17  ;;  %v344_v17 = vadd.f32 %v3255_v9, %v125_v11  ;;  %v2837_v9 = vld [vmem:[#allocation7 + $0x3c0] ss:$16 sps:$4 sm:$0xff]  }
 0x254   :  { %1996 = vmatmul.mubr.bf16.vlgmr.msra.gmra.mrb[8].mxu0 %v3046_v18  ;;  %2160 = vmatmul.mubr.bf16.vlgmr.msra.gmra.mrb[8].mxu1 %v3046_v18  ;;  %v3048_v21 = vpop.eup %3047  ;;  %v2825_v18 = vld [vmem:[#allocation7 + $0x380] ss:$16 sps:$4 sm:$0xff]  }
 0x255   :  { %2005 = vmatpush1.bf16.msra.mxu0 %v2753_v15  ;;  %2169 = vmatpush1.bf16.msra.mxu1 %v2756_v16  ;;  %v2830_v15 = vld [vmem:[#allocation7 + $0x38c] ss:$16 sps:$4 sm:$0xff]   ;;  %v301_v16 = vadd.f32 %v3249_v58, %v113_v6  ;;  %v2891_v11 = vld [vmem:[#allocation7 + $0x4e0] ss:$16 sps:$4 sm:$0xff]  }
 0x256   :  { %2036 = vmatprep.mubr.bf16.mxu0 %v3048_v21  ;;  %2200 = vmatprep.mubr.bf16.mxu1 %v3048_v21  ;;  %v2836_v21 = vld [vmem:[#allocation7 + $0x3ac] ss:$16 sps:$4 sm:$0xff]  }
 0x257   :  { %2006 = vmatprep.subr.bf16.mxu0 %v2761_v19  ;;  %2170 = vmatprep.subr.bf16.mxu1 %v2764_v20  ;;  %v2828_v19 = vld [vmem:[#allocation7 + $0x388] ss:$16 sps:$4 sm:$0xff]   ;;  %v2833_v20 = vld [vmem:[#allocation7 + $0x3a4] ss:$16 sps:$4 sm:$0xff]   ;;  %v2842_v58 = vld [vmem:[#allocation7 + $0x3cc] ss:$16 sps:$4 sm:$0xff]  }
 0x258   :  { %v2896_v6 = vld [vmem:[#allocation7 + $0x4ec] ss:$16 sps:$4 sm:$0xff]  }
 0x259   :  { %2007 = vmatpush1.bf16.msra.mxu0 %v2759_v22  ;;  %2171 = vmatpush1.bf16.msra.mxu1 %v2762_v23  ;;  %v391_v22 = vpack.c.bf16 %v301_v16, %v301_v16  ;;  %v394_v23 = vpack.c.bf16 %v344_v17, %v344_v17  ;;  %v2900_v16 = vld [vmem:[#allocation7 + $0x508] ss:$16 sps:$4 sm:$0xff]   ;;  %v2905_v17 = vld [vmem:[#allocation7 + $0x524] ss:$16 sps:$4 sm:$0xff]  }
 0x25a   :  { %2008 = vmatprep.subr.bf16.mxu0 %v2767_v24  ;;  %2172 = vmatprep.subr.bf16.mxu1 %v2770_v25  ;;  %v2831_v24 = vld [vmem:[#allocation7 + $0x3a0] ss:$16 sps:$4 sm:$0xff]   ;;  %v2834_v25 = vld [vmem:[#allocation7 + $0x3a8] ss:$16 sps:$4 sm:$0xff]  }
 0x25b   :  { %3049 = vtanh.bf16 %v391_v22  ;;  %v2914_v22 = vld [vmem:[#allocation7 + $0x54c] ss:$16 sps:$4 sm:$0xff]  }
 0x25c   :  { %3051 = vtanh.bf16 %v394_v23  ;;  %v120_v23 = vsub.s32 4, %v3227_v49 }
 0x25d   :  { %2009 = vmatpush1.bf16.msra.mxu0 %v2765_v26  ;;  %2173 = vmatpush1.bf16.msra.mxu1 %v2768_v27  ;;  %v2839_v26 = vld [vmem:[#allocation7 + $0x3c4] ss:$16 sps:$4 sm:$0xff]   ;;  %v2840_v27 = vld [vmem:[#allocation7 + $0x3c8] ss:$16 sps:$4 sm:$0xff]  }
 0x25e   :  { %2010 = vmatprep.subr.bf16.mxu0 %v2773_v28  ;;  %2174 = vmatprep.subr.bf16.mxu1 %v2776_v29  ;;  %v2845_v28 = vld [vmem:[#allocation7 + $0x3e4] ss:$16 sps:$4 sm:$0xff]   ;;  %v2848_v29 = vld [vmem:[#allocation7 + $0x3ec] ss:$16 sps:$4 sm:$0xff]  }
 0x261   :  { %2011 = vmatpush1.bf16.msra.mxu0 %v2771_v30  ;;  %2175 = vmatpush1.bf16.msra.mxu1 %v2774_v31  ;;  %v2843_v30 = vld [vmem:[#allocation7 + $0x3e0] ss:$16 sps:$4 sm:$0xff]   ;;  %v2846_v31 = vld [vmem:[#allocation7 + $0x3e8] ss:$16 sps:$4 sm:$0xff]  }
 0x262   :  { %2012 = vmatprep.subr.bf16.mxu0 %v2779_v32  ;;  %2176 = vmatprep.subr.bf16.mxu1 %v2782_v33  ;;  %v2851_v32 = vld [vmem:[#allocation7 + $0x404] ss:$16 sps:$4 sm:$0xff]   ;;  %v2854_v33 = vld [vmem:[#allocation7 + $0x40c] ss:$16 sps:$4 sm:$0xff]  }
 0x265   :  { %2013 = vmatpush1.bf16.msra.mxu0 %v2777_v34  ;;  %2177 = vmatpush1.bf16.msra.mxu1 %v2780_v35  ;;  %v2849_v34 = vld [vmem:[#allocation7 + $0x400] ss:$16 sps:$4 sm:$0xff]   ;;  %v2852_v35 = vld [vmem:[#allocation7 + $0x408] ss:$16 sps:$4 sm:$0xff]  }
 0x266   :  { %2014 = vmatprep.subr.bf16.mxu0 %v2785_v36  ;;  %2178 = vmatprep.subr.bf16.mxu1 %v2788_v37  ;;  %v3050_v36 = vpop.eup %3049  ;;  %v2857_v37 = vld [vmem:[#allocation7 + $0x424] ss:$16 sps:$4 sm:$0xff]  }
 0x269   :  { %2015 = vmatpush1.bf16.msra.mxu0 %v2783_v38  ;;  %2179 = vmatpush1.bf16.msra.mxu1 %v2786_v39  ;;  %v2860_v38 = vld [vmem:[#allocation7 + $0x42c] ss:$16 sps:$4 sm:$0xff]   ;;  %v3052_v39 = vpop.eup %3051 }
 0x26a   :  { %2016 = vmatprep.subr.bf16.mxu0 %v2791_v40  ;;  %2180 = vmatprep.subr.bf16.mxu1 %v2794_v41  ;;  %v2855_v40 = vld [vmem:[#allocation7 + $0x420] ss:$16 sps:$4 sm:$0xff]   ;;  %v2858_v41 = vld [vmem:[#allocation7 + $0x428] ss:$16 sps:$4 sm:$0xff]  }
 0x26d   :  { %2017 = vmatpush1.bf16.msra.mxu0 %v2789_v42  ;;  %2181 = vmatpush1.bf16.msra.mxu1 %v2792_v43  ;;  %v2863_v42 = vld [vmem:[#allocation7 + $0x444] ss:$16 sps:$4 sm:$0xff]   ;;  %v2866_v43 = vld [vmem:[#allocation7 + $0x44c] ss:$16 sps:$4 sm:$0xff]  }
 0x26e   :  { %2018 = vmatprep.subr.bf16.mxu0 %v2797_v44  ;;  %2182 = vmatprep.subr.bf16.mxu1 %v2800_v45  ;;  %v2861_v44 = vld [vmem:[#allocation7 + $0x440] ss:$16 sps:$4 sm:$0xff]   ;;  %v2864_v45 = vld [vmem:[#allocation7 + $0x448] ss:$16 sps:$4 sm:$0xff]  }
 0x271   :  { %2019 = vmatpush1.bf16.msra.mxu0 %v2795_v46  ;;  %2183 = vmatpush1.bf16.msra.mxu1 %v2798_v47  ;;  %v2869_v46 = vld [vmem:[#allocation7 + $0x464] ss:$16 sps:$4 sm:$0xff]   ;;  %v2872_v47 = vld [vmem:[#allocation7 + $0x46c] ss:$16 sps:$4 sm:$0xff]  }
 0x272   :  { %2020 = vmatprep.subr.bf16.mxu0 %v2803_v48  ;;  %2184 = vmatprep.subr.bf16.mxu1 %v2806_v54  ;;  %v2867_v48 = vld [vmem:[#allocation7 + $0x460] ss:$16 sps:$4 sm:$0xff]   ;;  %v2870_v54 = vld [vmem:[#allocation7 + $0x468] ss:$16 sps:$4 sm:$0xff]  }
 0x275   :  { %2021 = vmatpush1.bf16.msra.mxu0 %v2801_v55  ;;  %2185 = vmatpush1.bf16.msra.mxu1 %v2804_v56  ;;  %v2875_v55 = vld [vmem:[#allocation7 + $0x484] ss:$16 sps:$4 sm:$0xff]   ;;  %v2878_v56 = vld [vmem:[#allocation7 + $0x48c] ss:$16 sps:$4 sm:$0xff]  }
 0x276   :  { %2022 = vmatprep.subr.bf16.mxu0 %v2809_v57  ;;  %2186 = vmatprep.subr.bf16.mxu1 %v2812_v59  ;;  %v2873_v57 = vld [vmem:[#allocation7 + $0x480] ss:$16 sps:$4 sm:$0xff]   ;;  %v2876_v59 = vld [vmem:[#allocation7 + $0x488] ss:$16 sps:$4 sm:$0xff]  }
 0x279   :  { %2023 = vmatpush1.bf16.msra.mxu0 %v2807_v60  ;;  %2187 = vmatpush1.bf16.msra.mxu1 %v2810_v61  ;;  %v2881_v60 = vld [vmem:[#allocation7 + $0x4a4] ss:$16 sps:$4 sm:$0xff]   ;;  %v2884_v61 = vld [vmem:[#allocation7 + $0x4ac] ss:$16 sps:$4 sm:$0xff]  }
 0x27a   :  { %2024 = vmatprep.subr.bf16.mxu0 %v2815_v62  ;;  %2188 = vmatprep.subr.bf16.mxu1 %v2818_v63  ;;  %v2879_v62 = vld [vmem:[#allocation7 + $0x4a0] ss:$16 sps:$4 sm:$0xff]   ;;  %v2882_v63 = vld [vmem:[#allocation7 + $0x4a8] ss:$16 sps:$4 sm:$0xff]  }
 0x27d   :  { %2025 = vmatpush1.bf16.msra.mxu0 %v2813_v2  ;;  %2189 = vmatpush1.bf16.msra.mxu1 %v2816_v3  ;;  %v2890_v2 = vld [vmem:[#allocation7 + $0x4cc] ss:$16 sps:$4 sm:$0xff]   ;;  %v2885_v3 = vld [vmem:[#allocation7 + $0x4c0] ss:$16 sps:$4 sm:$0xff]  }
 0x27e   :  { %2026 = vmatprep.subr.bf16.mxu0 %v2821_v4  ;;  %2190 = vmatprep.subr.bf16.mxu1 %v2824_v5  ;;  %v2888_v4 = vld [vmem:[#allocation7 + $0x4c8] ss:$16 sps:$4 sm:$0xff]   ;;  %v2893_v5 = vld [vmem:[#allocation7 + $0x4e4] ss:$16 sps:$4 sm:$0xff]  }
 0x281   :  { %2027 = vmatpush1.bf16.msra.mxu0 %v2819_v12  ;;  %2191 = vmatpush1.bf16.msra.mxu1 %v2822_v13  ;;  %v2894_v12 = vld [vmem:[#allocation7 + $0x4e8] ss:$16 sps:$4 sm:$0xff]   ;;  %v2899_v13 = vld [vmem:[#allocation7 + $0x504] ss:$16 sps:$4 sm:$0xff]  }
 0x282   :  { %2028 = vmatprep.subr.bf16.mxu0 %v2827_v14  ;;  %2192 = vmatprep.subr.bf16.mxu1 %v2830_v15  ;;  %v2902_v14 = vld [vmem:[#allocation7 + $0x50c] ss:$16 sps:$4 sm:$0xff]   ;;  %v2897_v15 = vld [vmem:[#allocation7 + $0x500] ss:$16 sps:$4 sm:$0xff]  }
 0x285   :  { %2029 = vmatpush1.bf16.msra.mxu0 %v2825_v18  ;;  %2193 = vmatpush1.bf16.msra.mxu1 %v2828_v19  ;;  %v2908_v18 = vld [vmem:[#allocation7 + $0x52c] ss:$16 sps:$4 sm:$0xff]   ;;  %v2903_v19 = vld [vmem:[#allocation7 + $0x520] ss:$16 sps:$4 sm:$0xff]  }
 0x286   :  { %2030 = vmatprep.subr.bf16.mxu0 %v2833_v20  ;;  %2194 = vmatprep.subr.bf16.mxu1 %v2836_v21  ;;  %v2906_v20 = vld [vmem:[#allocation7 + $0x528] ss:$16 sps:$4 sm:$0xff]   ;;  %v2911_v21 = vld [vmem:[#allocation7 + $0x544] ss:$16 sps:$4 sm:$0xff]  }
 0x289   :  { %2031 = vmatpush1.bf16.msra.mxu0 %v2831_v24  ;;  %2195 = vmatpush1.bf16.msra.mxu1 %v2834_v25  ;;  %v2909_v24 = vld [vmem:[#allocation7 + $0x540] ss:$16 sps:$4 sm:$0xff]   ;;  %v132_v25 = vsub.s32 7, %v3227_v49 }
 0x28a   :  { %2032 = vmatprep.subr.bf16.mxu0 %v2839_v26  ;;  %2196 = vmatprep.subr.bf16.mxu1 %v2842_v58  ;;  %v2912_v26 = vld [vmem:[#allocation7 + $0x548] ss:$16 sps:$4 sm:$0xff]   ;;  %v2917_v58 = vld [vmem:[#allocation7 + $0x564] ss:$16 sps:$4 sm:$0xff]  }
 0x28d   :  { %2033 = vmatpush1.bf16.msra.mxu0 %v2837_v9  ;;  %2197 = vmatpush1.bf16.msra.mxu1 %v2840_v27  ;;  %v2920_v9 = vld [vmem:[#allocation7 + $0x56c] ss:$16 sps:$4 sm:$0xff]   ;;  %v121_v27 = vrot.slane %v3235_v51, %v120_v23 }
 0x28e   :  { %2034 = vmatprep.subr.bf16.mxu0 %v2845_v28  ;;  %2198 = vmatprep.subr.bf16.mxu1 %v2848_v29  ;;  %v2915_v28 = vld [vmem:[#allocation7 + $0x560] ss:$16 sps:$4 sm:$0xff]   ;;  %v133_v29 = vrot.slane %v3235_v51, %v132_v25  ;;  %v2986_v23 = vld [vmem:[#allocation7 + $0x6cc] ss:$16 sps:$4 sm:$0xff]   ;;  %v2984_v25 = vld [vmem:[#allocation7 + $0x6c8] ss:$16 sps:$4 sm:$0xff]  }
 0x291   :  { %2035 = vmatpush1.bf16.msra.mxu0 %v2843_v30  ;;  %2199 = vmatpush1.bf16.msra.mxu1 %v2846_v31  ;;  %v2918_v30 = vld [vmem:[#allocation7 + $0x568] ss:$16 sps:$4 sm:$0xff]   ;;  %v2923_v31 = vld [vmem:[#allocation7 + $0x584] ss:$16 sps:$4 sm:$0xff]  }
 0x292   :  { %2045 = vmatprep.subr.bf16.mxu0 %v2851_v32  ;;  %2209 = vmatprep.subr.bf16.mxu1 %v2854_v33  ;;  %v2926_v32 = vld [vmem:[#allocation7 + $0x58c] ss:$16 sps:$4 sm:$0xff]   ;;  %v342_v33 = vadd.f32 %v3251_v7, %v121_v27  ;;  %v2990_v27 = vld [vmem:[#allocation7 + $0x6e8] ss:$16 sps:$4 sm:$0xff]  }
 0x293   :  { %v2938_v7 = vld [vmem:[#allocation7 + $0x5cc] ss:$16 sps:$4 sm:$0xff]  }
 0x294   :  { %2037 = vmatmul.mubr.bf16.vlgmr.msra.gmra.mrb[8].mxu0 %v3050_v36  ;;  %2201 = vmatmul.mubr.bf16.vlgmr.msra.gmra.mrb[8].mxu1 %v3050_v36  ;;  %v2924_v36 = vld [vmem:[#allocation7 + $0x588] ss:$16 sps:$4 sm:$0xff]  }
 0x295   :  { %2046 = vmatpush1.bf16.msra.mxu0 %v2849_v34  ;;  %2077 = vmatprep.mubr.bf16.mxu0 %v3052_v39  ;;  %v2921_v34 = vld [vmem:[#allocation7 + $0x580] ss:$16 sps:$4 sm:$0xff]  }
 0x296   :  { %2210 = vmatpush1.bf16.msra.mxu1 %v2852_v35  ;;  %2241 = vmatprep.mubr.bf16.mxu1 %v3052_v39  ;;  %v385_v35 = vadd.f32 %v3257_v10, %v133_v29  ;;  %v393_v39 = vpack.c.bf16 %v342_v33, %v342_v33  ;;  %v2936_v10 = vld [vmem:[#allocation7 + $0x5c8] ss:$16 sps:$4 sm:$0xff]   ;;  %v2998_v29 = vld [vmem:[#allocation7 + $0x70c] ss:$16 sps:$4 sm:$0xff]  }
 0x297   :  { %2047 = vmatprep.subr.bf16.mxu0 %v2857_v37  ;;  %2211 = vmatprep.subr.bf16.mxu1 %v2860_v38  ;;  %v2929_v37 = vld [vmem:[#allocation7 + $0x5a4] ss:$16 sps:$4 sm:$0xff]   ;;  %v2932_v38 = vld [vmem:[#allocation7 + $0x5ac] ss:$16 sps:$4 sm:$0xff]  }
 0x298   :  { %3053 = vtanh.bf16 %v393_v39  ;;  %v3004_v33 = vld [vmem:[#allocation7 + $0x72c] ss:$16 sps:$4 sm:$0xff]   ;;  %v3005_v39 = vld [vmem:[#allocation7 + $0x740] ss:$16 sps:$4 sm:$0xff]  }
 0x299   :  { %2048 = vmatpush1.bf16.msra.mxu0 %v2855_v40  ;;  %v2927_v40 = vld [vmem:[#allocation7 + $0x5a0] ss:$16 sps:$4 sm:$0xff]  }
 0x29a   :  { %2212 = vmatpush1.bf16.msra.mxu1 %v2858_v41  ;;  %2049 = vmatprep.subr.bf16.mxu0 %v2863_v42  ;;  %v396_v41 = vpack.c.bf16 %v385_v35, %v385_v35  ;;  %v2930_v42 = vld [vmem:[#allocation7 + $0x5a8] ss:$16 sps:$4 sm:$0xff]  }
 0x29b   :  { %2213 = vmatprep.subr.bf16.mxu1 %v2866_v43  ;;  %v2935_v43 = vld [vmem:[#allocation7 + $0x5c4] ss:$16 sps:$4 sm:$0xff]   ;;  %v3002_v35 = vld [vmem:[#allocation7 + $0x728] ss:$16 sps:$4 sm:$0xff]  }
 0x29c   :  { %3055 = vtanh.bf16 %v396_v41  ;;  %v3013_v41 = vld [vmem:[#allocation7 + $0x764] ss:$16 sps:$4 sm:$0xff]  }
 0x29d   :  { %2050 = vmatpush1.bf16.msra.mxu0 %v2861_v44  ;;  %v2933_v44 = vld [vmem:[#allocation7 + $0x5c0] ss:$16 sps:$4 sm:$0xff]  }
 0x29e   :  { %2214 = vmatpush1.bf16.msra.mxu1 %v2864_v45  ;;  %2051 = vmatprep.subr.bf16.mxu0 %v2869_v46  ;;  %v2941_v45 = vld [vmem:[#allocation7 + $0x5e4] ss:$16 sps:$4 sm:$0xff]   ;;  %v2944_v46 = vld [vmem:[#allocation7 + $0x5ec] ss:$16 sps:$4 sm:$0xff]  }
 0x29f   :  { %2215 = vmatprep.subr.bf16.mxu1 %v2872_v47  ;;  %v2939_v47 = vld [vmem:[#allocation7 + $0x5e0] ss:$16 sps:$4 sm:$0xff]  }
 0x2a1   :  { %2052 = vmatpush1.bf16.msra.mxu0 %v2867_v48  ;;  %v2942_v48 = vld [vmem:[#allocation7 + $0x5e8] ss:$16 sps:$4 sm:$0xff]  }
 0x2a2   :  { %2216 = vmatpush1.bf16.msra.mxu1 %v2870_v54  ;;  %2053 = vmatprep.subr.bf16.mxu0 %v2875_v55  ;;  %v2947_v54 = vld [vmem:[#allocation7 + $0x604] ss:$16 sps:$4 sm:$0xff]   ;;  %v2950_v55 = vld [vmem:[#allocation7 + $0x60c] ss:$16 sps:$4 sm:$0xff]  }
 0x2a3   :  { %2217 = vmatprep.subr.bf16.mxu1 %v2878_v56  ;;  %v2945_v56 = vld [vmem:[#allocation7 + $0x600] ss:$16 sps:$4 sm:$0xff]  }
 0x2a5   :  { %2054 = vmatpush1.bf16.msra.mxu0 %v2873_v57  ;;  %v2948_v57 = vld [vmem:[#allocation7 + $0x608] ss:$16 sps:$4 sm:$0xff]  }
 0x2a6   :  { %2218 = vmatpush1.bf16.msra.mxu1 %v2876_v59  ;;  %2055 = vmatprep.subr.bf16.mxu0 %v2881_v60  ;;  %v3054_v59 = vpop.eup %3053  ;;  %v2953_v60 = vld [vmem:[#allocation7 + $0x624] ss:$16 sps:$4 sm:$0xff]  }
 0x2a7   :  { %2219 = vmatprep.subr.bf16.mxu1 %v2884_v61  ;;  %v2956_v61 = vld [vmem:[#allocation7 + $0x62c] ss:$16 sps:$4 sm:$0xff]  }
 0x2a9   :  { %2056 = vmatpush1.bf16.msra.mxu0 %v2879_v62  ;;  %v3056_v62 = vpop.eup %3055 }
 0x2aa   :  { %2220 = vmatpush1.bf16.msra.mxu1 %v2882_v63  ;;  %2057 = vmatprep.subr.bf16.mxu0 %v2887_v1  ;;  %v2951_v63 = vld [vmem:[#allocation7 + $0x620] ss:$16 sps:$4 sm:$0xff]   ;;  %v2954_v1 = vld [vmem:[#allocation7 + $0x628] ss:$16 sps:$4 sm:$0xff]  }
 0x2ab   :  { %2221 = vmatprep.subr.bf16.mxu1 %v2890_v2  ;;  %v2959_v2 = vld [vmem:[#allocation7 + $0x644] ss:$16 sps:$4 sm:$0xff]  }
 0x2ad   :  { %2058 = vmatpush1.bf16.msra.mxu0 %v2885_v3  ;;  %v2962_v3 = vld [vmem:[#allocation7 + $0x64c] ss:$16 sps:$4 sm:$0xff]  }
 0x2ae   :  { %2222 = vmatpush1.bf16.msra.mxu1 %v2888_v4  ;;  %2059 = vmatprep.subr.bf16.mxu0 %v2893_v5  ;;  %v2957_v4 = vld [vmem:[#allocation7 + $0x640] ss:$16 sps:$4 sm:$0xff]   ;;  %v2960_v5 = vld [vmem:[#allocation7 + $0x648] ss:$16 sps:$4 sm:$0xff]  }
 0x2af   :  { %2223 = vmatprep.subr.bf16.mxu1 %v2896_v6  ;;  %v2965_v6 = vld [vmem:[#allocation7 + $0x664] ss:$16 sps:$4 sm:$0xff]  }
 0x2b1   :  { %2060 = vmatpush1.bf16.msra.mxu0 %v2891_v11  ;;  %v2968_v11 = vld [vmem:[#allocation7 + $0x66c] ss:$16 sps:$4 sm:$0xff]  }
 0x2b2   :  { %2224 = vmatpush1.bf16.msra.mxu1 %v2894_v12  ;;  %2061 = vmatprep.subr.bf16.mxu0 %v2899_v13  ;;  %v2963_v12 = vld [vmem:[#allocation7 + $0x660] ss:$16 sps:$4 sm:$0xff]   ;;  %v2966_v13 = vld [vmem:[#allocation7 + $0x668] ss:$16 sps:$4 sm:$0xff]  }
 0x2b3   :  { %2225 = vmatprep.subr.bf16.mxu1 %v2902_v14  ;;  %v2971_v14 = vld [vmem:[#allocation7 + $0x684] ss:$16 sps:$4 sm:$0xff]  }
 0x2b5   :  { %2062 = vmatpush1.bf16.msra.mxu0 %v2897_v15  ;;  %v2974_v15 = vld [vmem:[#allocation7 + $0x68c] ss:$16 sps:$4 sm:$0xff]  }
 0x2b6   :  { %2226 = vmatpush1.bf16.msra.mxu1 %v2900_v16  ;;  %2063 = vmatprep.subr.bf16.mxu0 %v2905_v17  ;;  %v2969_v16 = vld [vmem:[#allocation7 + $0x680] ss:$16 sps:$4 sm:$0xff]   ;;  %v2972_v17 = vld [vmem:[#allocation7 + $0x688] ss:$16 sps:$4 sm:$0xff]  }
 0x2b7   :  { %2227 = vmatprep.subr.bf16.mxu1 %v2908_v18  ;;  %v2977_v18 = vld [vmem:[#allocation7 + $0x6a4] ss:$16 sps:$4 sm:$0xff]  }
 0x2b9   :  { %2064 = vmatpush1.bf16.msra.mxu0 %v2903_v19  ;;  %v2980_v19 = vld [vmem:[#allocation7 + $0x6ac] ss:$16 sps:$4 sm:$0xff]  }
 0x2ba   :  { %2228 = vmatpush1.bf16.msra.mxu1 %v2906_v20  ;;  %2065 = vmatprep.subr.bf16.mxu0 %v2911_v21  ;;  %v2975_v20 = vld [vmem:[#allocation7 + $0x6a0] ss:$16 sps:$4 sm:$0xff]   ;;  %v2978_v21 = vld [vmem:[#allocation7 + $0x6a8] ss:$16 sps:$4 sm:$0xff]  }
 0x2bb   :  { %2229 = vmatprep.subr.bf16.mxu1 %v2914_v22  ;;  %v2983_v22 = vld [vmem:[#allocation7 + $0x6c4] ss:$16 sps:$4 sm:$0xff]  }
 0x2bd   :  { %2066 = vmatpush1.bf16.msra.mxu0 %v2909_v24  ;;  %v2981_v24 = vld [vmem:[#allocation7 + $0x6c0] ss:$16 sps:$4 sm:$0xff]  }
 0x2be   :  { %2230 = vmatpush1.bf16.msra.mxu1 %v2912_v26  ;;  %2067 = vmatprep.subr.bf16.mxu0 %v2917_v58  ;;  %v2989_v26 = vld [vmem:[#allocation7 + $0x6e4] ss:$16 sps:$4 sm:$0xff]   ;;  %v2992_v58 = vld [vmem:[#allocation7 + $0x6ec] ss:$16 sps:$4 sm:$0xff]  }
 0x2bf   :  { %2231 = vmatprep.subr.bf16.mxu1 %v2920_v9  ;;  %v2987_v9 = vld [vmem:[#allocation7 + $0x6e0] ss:$16 sps:$4 sm:$0xff]  }
 0x2c1   :  { %2068 = vmatpush1.bf16.msra.mxu0 %v2915_v28  ;;  %v2995_v28 = vld [vmem:[#allocation7 + $0x704] ss:$16 sps:$4 sm:$0xff]  }
 0x2c2   :  { %2232 = vmatpush1.bf16.msra.mxu1 %v2918_v30  ;;  %2069 = vmatprep.subr.bf16.mxu0 %v2923_v31  ;;  %v2993_v30 = vld [vmem:[#allocation7 + $0x700] ss:$16 sps:$4 sm:$0xff]   ;;  %v2996_v31 = vld [vmem:[#allocation7 + $0x708] ss:$16 sps:$4 sm:$0xff]  }
 0x2c3   :  { %2233 = vmatprep.subr.bf16.mxu1 %v2926_v32  ;;  %v3001_v32 = vld [vmem:[#allocation7 + $0x724] ss:$16 sps:$4 sm:$0xff]  }
 0x2c5   :  { %2070 = vmatpush1.bf16.msra.mxu0 %v2921_v34  ;;  %v2999_v34 = vld [vmem:[#allocation7 + $0x720] ss:$16 sps:$4 sm:$0xff]  }
 0x2c6   :  { %2234 = vmatpush1.bf16.msra.mxu1 %v2924_v36  ;;  %2071 = vmatprep.subr.bf16.mxu0 %v2929_v37  ;;  %v3007_v36 = vld [vmem:[#allocation7 + $0x744] ss:$16 sps:$4 sm:$0xff]   ;;  %v3010_v37 = vld [vmem:[#allocation7 + $0x74c] ss:$16 sps:$4 sm:$0xff]  }
 0x2c7   :  { %2235 = vmatprep.subr.bf16.mxu1 %v2932_v38  ;;  %v128_v38 = vsub.s32 6, %v3227_v49 }
 0x2c9   :  { %2072 = vmatpush1.bf16.msra.mxu0 %v2927_v40  ;;  %v3008_v40 = vld [vmem:[#allocation7 + $0x748] ss:$16 sps:$4 sm:$0xff]  }
 0x2ca   :  { %2236 = vmatpush1.bf16.msra.mxu1 %v2930_v42  ;;  %2073 = vmatprep.subr.bf16.mxu0 %v2935_v43  ;;  %v3016_v42 = vld [vmem:[#allocation7 + $0x76c] ss:$16 sps:$4 sm:$0xff]   ;;  %v129_v43 = vrot.slane %v3235_v51, %v128_v38  ;;  %v3023_v51 = vld [vmem:[#allocation7 + $0x7a0] ss:$16 sps:$4 sm:$0xff]  }
 0x2cb   :  { %2237 = vmatprep.subr.bf16.mxu1 %v2938_v7  ;;  %v3011_v7 = vld [vmem:[#allocation7 + $0x760] ss:$16 sps:$4 sm:$0xff]  }
 0x2cc   :  { %v383_v49 = vadd.f32 %v3253_v8, %v129_v43  ;;  %v3029_v8 = vld [vmem:[#allocation7 + $0x7c0] ss:$16 sps:$4 sm:$0xff]  }
 0x2cd   :  { %2074 = vmatpush1.bf16.msra.mxu0 %v2933_v44  ;;  %v3014_v44 = vld [vmem:[#allocation7 + $0x768] ss:$16 sps:$4 sm:$0xff]  }
 0x2ce   :  { %2238 = vmatpush1.bf16.msra.mxu1 %v2936_v10  ;;  %2075 = vmatprep.subr.bf16.mxu0 %v2941_v45  ;;  %v3019_v10 = vld [vmem:[#allocation7 + $0x784] ss:$16 sps:$4 sm:$0xff]   ;;  %v3022_v45 = vld [vmem:[#allocation7 + $0x78c] ss:$16 sps:$4 sm:$0xff]  }
 0x2cf   :  { %2239 = vmatprep.subr.bf16.mxu1 %v2944_v46  ;;  %v3017_v46 = vld [vmem:[#allocation7 + $0x780] ss:$16 sps:$4 sm:$0xff]  }
 0x2d1   :  { %2076 = vmatpush1.bf16.msra.mxu0 %v2939_v47  ;;  %v3020_v47 = vld [vmem:[#allocation7 + $0x788] ss:$16 sps:$4 sm:$0xff]  }
 0x2d2   :  { %2240 = vmatpush1.bf16.msra.mxu1 %v2942_v48  ;;  %2086 = vmatprep.subr.bf16.mxu0 %v2947_v54  ;;  %v3025_v48 = vld [vmem:[#allocation7 + $0x7a4] ss:$16 sps:$4 sm:$0xff]   ;;  %v3028_v54 = vld [vmem:[#allocation7 + $0x7ac] ss:$16 sps:$4 sm:$0xff]  }
 0x2d3   :  { %2250 = vmatprep.subr.bf16.mxu1 %v2950_v55  ;;  %v395_v55 = vpack.c.bf16 %v383_v49, %v383_v49 }
 0x2d4   :  { %2078 = vmatmul.mubr.bf16.vlgmr.msra.gmra.mrb[8].mxu0 %v3054_v59 }
 0x2d5   :  { %2242 = vmatmul.mubr.bf16.vlgmr.msra.gmra.mrb[8].mxu1 %v3054_v59  ;;  %2087 = vmatpush1.bf16.msra.mxu0 %v2945_v56  ;;  %v3026_v56 = vld [vmem:[#allocation7 + $0x7a8] ss:$16 sps:$4 sm:$0xff]   ;;  %v3034_v59 = vld [vmem:[#allocation7 + $0x7cc] ss:$16 sps:$4 sm:$0xff]   ;;  %3057 = vtanh.bf16 %v395_v55 }
 0x2d6   :  { %2118 = vmatprep.mubr.bf16.mxu0 %v3056_v62  ;;  %2251 = vmatpush1.bf16.msra.mxu1 %v2948_v57  ;;  %v3031_v57 = vld [vmem:[#allocation7 + $0x7c4] ss:$16 sps:$4 sm:$0xff]  }
 0x2d7   :  { %2282 = vmatprep.mubr.bf16.mxu1 %v3056_v62  ;;  %2088 = vmatprep.subr.bf16.mxu0 %v2953_v60  ;;  %v3032_v60 = vld [vmem:[#allocation7 + $0x7c8] ss:$16 sps:$4 sm:$0xff]   ;;  %v3040_v62 = vld [vmem:[#allocation7 + $0x7ec] ss:$16 sps:$4 sm:$0xff]  }
 0x2d8   :  { %2252 = vmatprep.subr.bf16.mxu1 %v2956_v61  ;;  %v3037_v61 = vld [vmem:[#allocation7 + $0x7e4] ss:$16 sps:$4 sm:$0xff]  }
 0x2d9   :  { %2089 = vmatpush1.bf16.msra.mxu0 %v2951_v63  ;;  %v3035_v63 = vld [vmem:[#allocation7 + $0x7e0] ss:$16 sps:$4 sm:$0xff]  }
 0x2da   :  { %2253 = vmatpush1.bf16.msra.mxu1 %v2954_v1  ;;  %2090 = vmatprep.subr.bf16.mxu0 %v2959_v2  ;;  %v3038_v1 = vld [vmem:[#allocation7 + $0x7e8] ss:$16 sps:$4 sm:$0xff]  }
 0x2db   :  { %2254 = vmatprep.subr.bf16.mxu1 %v2962_v3  ;;  %v661_v3 = vld [vmem:[%s3301_s4] sm:$0xf] }
 0x2dd   :  { %2091 = vmatpush1.bf16.msra.mxu0 %v2957_v4  ;;  %v666_v4 = vrot.slane %v661_v3, %v3230_v50 }
 0x2de   :  { %2255 = vmatpush1.bf16.msra.mxu1 %v2960_v5  ;;  %2092 = vmatprep.subr.bf16.mxu0 %v2965_v6  ;;  %v674_v5 = vrot.slane %v661_v3, %v3260_v0  ;;  %v670_v6 = vrot.slane %v661_v3, %v3238_v52 }
 0x2df   :  { %2256 = vmatprep.subr.bf16.mxu1 %v2968_v11  ;;  %v678_v11 = vrot.slane %v661_v3, %v3241_v53 }
 0x2e0   :  { %v3058_v2 = vpop.eup %3057 }
 0x2e1   :  { %2093 = vmatpush1.bf16.msra.mxu0 %v2963_v12 }
 0x2e2   :  { %2257 = vmatpush1.bf16.msra.mxu1 %v2966_v13  ;;  %2094 = vmatprep.subr.bf16.mxu0 %v2971_v14 }
 0x2e3   :  { %2258 = vmatprep.subr.bf16.mxu1 %v2974_v15 }
 0x2e5   :  { %2095 = vmatpush1.bf16.msra.mxu0 %v2969_v16 }
 0x2e6   :  { %2259 = vmatpush1.bf16.msra.mxu1 %v2972_v17  ;;  %2096 = vmatprep.subr.bf16.mxu0 %v2977_v18 }
 0x2e7   :  { %2260 = vmatprep.subr.bf16.mxu1 %v2980_v19 }
 0x2e9   :  { %2097 = vmatpush1.bf16.msra.mxu0 %v2975_v20 }
 0x2ea   :  { %2261 = vmatpush1.bf16.msra.mxu1 %v2978_v21  ;;  %2098 = vmatprep.subr.bf16.mxu0 %v2983_v22 }
 0x2eb   :  { %2262 = vmatprep.subr.bf16.mxu1 %v2986_v23 }
 0x2ed   :  { %2099 = vmatpush1.bf16.msra.mxu0 %v2981_v24 }
 0x2ee   :  { %2263 = vmatpush1.bf16.msra.mxu1 %v2984_v25  ;;  %2100 = vmatprep.subr.bf16.mxu0 %v2989_v26 }
 0x2ef   :  { %2264 = vmatprep.subr.bf16.mxu1 %v2992_v58 }
 0x2f1   :  { %2101 = vmatpush1.bf16.msra.mxu0 %v2987_v9  ;;  %v2303_v9 = vld [vmem:[%s3302_s5] sm:$0xf] }
 0x2f2   :  { %2265 = vmatpush1.bf16.msra.mxu1 %v2990_v27  ;;  %2102 = vmatprep.subr.bf16.mxu0 %v2995_v28  ;;  %v2308_v27 = vrot.slane %v2303_v9, %v3230_v50 }
 0x2f3   :  { %2266 = vmatprep.subr.bf16.mxu1 %v2998_v29 }
 0x2f5   :  { %2103 = vmatpush1.bf16.msra.mxu0 %v2993_v30 }
 0x2f6   :  { %2267 = vmatpush1.bf16.msra.mxu1 %v2996_v31  ;;  %2104 = vmatprep.subr.bf16.mxu0 %v3001_v32  ;;  %v2312_v31 = vrot.slane %v2303_v9, %v3238_v52  ;;  %v2335_v52 = vstv %s3303_s6 }
 0x2f7   :  { %2268 = vmatprep.subr.bf16.mxu1 %v3004_v33 }
 0x2f9   :  { %2105 = vmatpush1.bf16.msra.mxu0 %v2999_v34 }
 0x2fa   :  { %2269 = vmatpush1.bf16.msra.mxu1 %v3002_v35  ;;  %2106 = vmatprep.subr.bf16.mxu0 %v3007_v36  ;;  %v2316_v36 = vrot.slane %v2303_v9, %v3260_v0 }
 0x2fb   :  { %2270 = vmatprep.subr.bf16.mxu1 %v3010_v37 }
 0x2fd   :  { %2107 = vmatpush1.bf16.msra.mxu0 %v3005_v39  ;;  %v2320_v39 = vrot.slane %v2303_v9, %v3241_v53 }
 0x2fe   :  { %2271 = vmatpush1.bf16.msra.mxu1 %v3008_v40  ;;  %2108 = vmatprep.subr.bf16.mxu0 %v3013_v41 }
 0x2ff   :  { %2272 = vmatprep.subr.bf16.mxu1 %v3016_v42 }
 0x301   :  { %2109 = vmatpush1.bf16.msra.mxu0 %v3011_v7 }
 0x302   :  { %2273 = vmatpush1.bf16.msra.mxu1 %v3014_v44  ;;  %2110 = vmatprep.subr.bf16.mxu0 %v3019_v10 }
 0x303   :  { %2274 = vmatprep.subr.bf16.mxu1 %v3022_v45 }
 0x305   :  { %2111 = vmatpush1.bf16.msra.mxu0 %v3017_v46 }
 0x306   :  { %2275 = vmatpush1.bf16.msra.mxu1 %v3020_v47  ;;  %2112 = vmatprep.subr.bf16.mxu0 %v3025_v48 }
 0x307   :  { %2276 = vmatprep.subr.bf16.mxu1 %v3028_v54 }
 0x309   :  { %2113 = vmatpush1.bf16.msra.mxu0 %v3023_v51 }
 0x30a   :  { %2277 = vmatpush1.bf16.msra.mxu1 %v3026_v56  ;;  %2114 = vmatprep.subr.bf16.mxu0 %v3031_v57 }
 0x30b   :  { %2278 = vmatprep.subr.bf16.mxu1 %v3034_v59 }
 0x30d   :  { %2115 = vmatpush1.bf16.msra.mxu0 %v3029_v8 }
 0x30e   :  { %2279 = vmatpush1.bf16.msra.mxu1 %v3032_v60  ;;  %2116 = vmatprep.subr.bf16.mxu0 %v3037_v61 }
 0x30f   :  { %2280 = vmatprep.subr.bf16.mxu1 %v3040_v62 }
 0x311   :  { %2117 = vmatpush1.bf16.msra.mxu0 %v3035_v63 }
 0x312   :  { %2281 = vmatpush1.bf16.msra.mxu1 %v3038_v1 }
 0x314   :  { %2119 = vmatmul.mubr.bf16.vlgmr.msra.gmra.mrb[8].mxu0 %v3058_v2 }
 0x315   :  { %2283 = vmatmul.mubr.bf16.vlgmr.msra.gmra.mrb[8].mxu1 %v3058_v2 }
 0x3e7   :  { %v2120_v12 = vpop.f32.mrb[8].mxu0 }
 0x3e8   :  { %v2621_v13 = vadd.f32 %v2120_v12, %v666_v4  ;;  %v2284_v14 = vpop.f32.mrb[8].mxu1  ;;  %v2122_v15 = vpop.f32.mrb[9].mxu0 }
 0x3e9   :  { %v2623_v16 = vadd.f32 %v2284_v14, %v674_v5  ;;  %v2622_v17 = vadd.f32 %v2122_v15, %v670_v6  ;;  %v2286_v18 = vpop.f32.mrb[9].mxu1  ;;  %v2124_v19 = vpop.f32.mrb[10].mxu0 }
 0x3ea   :  { %v2291_v20 = vpack.c.bf16 %v2621_v13, %v2621_v13  ;;  %v2624_v21 = vadd.f32 %v2286_v18, %v678_v11  ;;  %v2288_v22 = vpop.f32.mrb[10].mxu1  ;;  %v2125_v23 = vpop.f32.mrb[11].mxu0 }
 0x3eb   :  { %v2293_v24 = vpack.c.bf16 %v2623_v16, %v2623_v16  ;;  %v2292_v25 = vpack.c.bf16 %v2622_v17, %v2622_v17  ;;  %v2289_v26 = vpop.f32.mrb[11].mxu1 }
 0x3ec   :  { %3059 = vtanh.bf16 %v2291_v20  ;;  %v2294_v58 = vpack.c.bf16 %v2624_v21, %v2624_v21 }
 0x3ed   :  { %3061 = vtanh.bf16 %v2293_v24 }
 0x3ee   :  { %3063 = vtanh.bf16 %v2292_v25 }
 0x3ef   :  { %3065 = vtanh.bf16 %v2294_v58 }
 0x3f7   :  { %v3060_v28 = vpop.eup %3059 }
 0x3f8   :  { %v3062_v29 = vpop.eup %3061  ;;  %v2299_v30 = vunpack.c.l.bf16 %v3060_v28 }
 0x3f9   :  { %v3064_v32 = vpop.eup %3063  ;;  %v2301_v34 = vunpack.c.l.bf16 %v3062_v29 }
 0x3fa   :  { %v3066_v33 = vpop.eup %3065  ;;  %v2300_v35 = vunpack.c.l.bf16 %v3064_v32  ;;  %v2325_v37 = vmul.f32 %v2308_v27, %v2299_v30 }
 0x3fb   :  { %v2302_v38 = vunpack.c.l.bf16 %v3066_v33  ;;  %v2327_v41 = vmul.f32 %v2316_v36, %v2301_v34 }
 0x3fc   :  { %v2326_v40 = vmul.f32 %v2312_v31, %v2300_v35 }
 0x3fd   :  { %v2328_v43 = vmul.f32 %v2320_v39, %v2302_v38 }
 0x3fe   :  { %v2329_v42 = vadd.f32 %v2326_v40, %v2325_v37 }
 0x400   :  { %v2330_v50 = vadd.f32 %v2329_v42, %v2327_v41 }
 0x402   :  { %v2331_v7 = vadd.f32 %v2330_v50, %v2328_v43 }
 0x404   :  { %2332 = vadd.xlane.f32.xlu1 %v2331_v7 }
 0x491   :  { %v2333_v44 = vpop.xlane.xlu1 %2332 }
 0x492   :  { %v2336_v10 = vadd.f32 %v2335_v52, %v2333_v44 }
 0x494   :  { %2338 = vst.msk [vmem:[%s3304_s7] sm:$0xff] %vm2337_vm1, %v2336_v10 }
 0x495   :  { %2343 = vsyncpa [#allocation4], 1 }
 0x496   :  { %2344 = vsyncpa [#allocation6], 1 }

</bundles_post_ra>
